<compile_context>
chip_gen: v7x
topology: tpu7x:2x2x1
jax: 0.10.0
libtpu: 0.0.40
codegen_flags: <defaults>
</compile_context>

<pallas_src>
import functools

import jax
import jax.numpy as jnp
from jax import lax
from jax.experimental import pallas as pl
from jax.experimental.pallas import tpu as pltpu


def _gru_chunk_kernel(x_ref, h0_ref, wih_ref, whh_ref, h_out_ref, h_scratch,
                      *, seq_len, unroll):
    """One grid step == one (batch-tile, time-chunk) of GRU steps.

    x_ref     : (TT, TB, M)   message chunk for this batch tile
    h0_ref    : (TB, Hp)      initial hidden state (gate-padded, batch-padded)
    wih_ref   : (M, 3*Hp)     W_ih^T, gate-blocked [r | z | n], each Hp wide
    whh_ref   : (Hp, 3*Hp)    W_hh^T, gate-blocked, padded
    h_out_ref : (TB, Hp)      final hidden state (written on last chunk)
    h_scratch : (TB, Hp) f32  hidden state carried across time chunks
    """
    c = pl.program_id(1)               # time-chunk axis (innermost)
    n_chunks = pl.num_programs(1)
    TT = x_ref.shape[0]
    TB, Hp = h_scratch.shape
    w_dtype = whh_ref.dtype

    @pl.when(c == 0)
    def _():
        h_scratch[...] = h0_ref[...].astype(jnp.float32)

    # Number of real (non-padded) time steps in this chunk.
    valid = seq_len - c * TT

    h_prev = h_scratch[...]            # (TB, Hp) f32

    def step(t, h):
        x_t = x_ref[t]                                         # (TB, M)
        # Non-recurrent projection: independent of h, scheduler hides it
        # behind the recurrent chain within the unrolled window.
        gi = jnp.dot(x_t, wih_ref[...],
                     preferred_element_type=jnp.float32)       # (TB, 3Hp)
        gh = jnp.dot(h.astype(w_dtype), whh_ref[...],
                     preferred_element_type=jnp.float32)       # (TB, 3Hp)
        # Lane-aligned gate slabs (Hp is a multiple of 128).
        i_r = gi[:, 0:Hp]
        i_z = gi[:, Hp:2 * Hp]
        i_n = gi[:, 2 * Hp:3 * Hp]
        h_r = gh[:, 0:Hp]
        h_z = gh[:, Hp:2 * Hp]
        h_n = gh[:, 2 * Hp:3 * Hp]
        r = jax.nn.sigmoid(i_r + h_r)
        z = jax.nn.sigmoid(i_z + h_z)
        n = jnp.tanh(i_n + r * h_n)
        h_new = (1.0 - z) * n + z * h
        # Tail-chunk gate: padded time steps leave h unchanged.
        return jnp.where(t < valid, h_new, h)

    h_new = lax.fori_loop(0, TT, step, h_prev, unroll=unroll)
    h_scratch[...] = h_new

    @pl.when(c == n_chunks - 1)
    def _():
        h_out_ref[...] = h_new.astype(h_out_ref.dtype)


def _round_up(x, m):
    return ((x + m - 1) // m) * m


def _cdiv(a, b):
    return (a + b - 1) // b


def gru_update(m_v, h_v, w_ih, w_hh, *, weights_dtype=None,
               vmem_budget_bytes=24 << 20):
    """UpdateFunction('gru').forward(h_v, m_v) -> final hidden state.

    m_v : (T, B, M)   messages (GRU input sequence)
    h_v : (1, B, H)   initial hidden state (num_layers == 1)
    w_ih: (3H, M)     PyTorch weight_ih_l0, gate order [r, z, n]
    w_hh: (3H, H)     PyTorch weight_hh_l0, gate order [r, z, n]
    weights_dtype: optional cast for MXU operands (e.g. jnp.bfloat16);
                   gate math / hidden carry stay f32 regardless.
    returns (1, B, H) with dtype of h_v (matches PyTorch h)
    """
    T, B, M = m_v.shape
    H = h_v.shape[-1]
    out_dtype = h_v.dtype

    if T == 0:
        # Empty sequence: GRU returns the initial hidden state unchanged.
        return h_v

    Hp = _round_up(H, 128)              # lane-align each gate block

    if weights_dtype is not None:
        w_ih = w_ih.astype(weights_dtype)
        w_hh = w_hh.astype(weights_dtype)

    # Gate-blocked, lane-aligned weight layout: split per gate, zero-pad the
    # gate output dim H -> Hp, then transpose.
    def pad_gates_T(w, in_dim):
        w = w.reshape(3, H, in_dim)                          # (3, H, in)
        w = jnp.pad(w, ((0, 0), (0, Hp - H), (0, 0)))        # (3, Hp, in)
        return jnp.transpose(w.reshape(3 * Hp, in_dim))      # (in, 3*Hp)

    wih_t = pad_gates_T(w_ih, M)                             # (M, 3*Hp)
    whh_t = pad_gates_T(w_hh, H)                             # (H, 3*Hp)
    whh_t = jnp.pad(whh_t, ((0, Hp - H), (0, 0)))            # (Hp, 3*Hp)

    # Batch tiling: sublane-aligned tiles; >1 tile lets megacore (v7x) shard
    # the parallel axis and bounds per-step VMEM for large B.
    TB = min(_round_up(B, 8), 32)
    Bp = _round_up(B, TB)
    nb = Bp // TB

    # VMEM-budget-driven chunk length TT (no TT | T requirement).
    x_bytes = m_v.dtype.itemsize
    w_bytes = wih_t.dtype.itemsize
    h_bytes = out_dtype.itemsize
    fixed = 2 * (M * 3 * Hp + Hp * 3 * Hp) * w_bytes   # weights, double-buffered
    fixed += 2 * TB * Hp * h_bytes * 2                 # h0 in + h out, double-buffered
    fixed += TB * Hp * 4                               # f32 hidden-state scratch
    per_t = 2 * TB * M * x_bytes                       # x rows per step, double-buffered
    avail = max(vmem_budget_bytes - fixed, per_t)
    TT = int(max(1, min(T, avail // per_t, 256)))
    n_chunks = _cdiv(T, TT)
    T_pad = n_chunks * TT
    unroll = int(min(TT, 8))
    vmem_limit = int(min(max(fixed + TT * per_t + (8 << 20), 16 << 20),
                         64 << 20))

    # Padded hidden columns / batch rows start at 0 and (with zero weight
    # cols/rows) never leak into real outputs; padded time steps are gated
    # out inside the kernel.
    m_pad = jnp.pad(m_v, ((0, T_pad - T), (0, Bp - B), (0, 0)))   # (T_pad, Bp, M)
    h0 = jnp.pad(h_v[0], ((0, Bp - B), (0, Hp - H)))              # (Bp, Hp)

    kernel = functools.partial(_gru_chunk_kernel, seq_len=T, unroll=unroll)

    h_final = pl.pallas_call(
        kernel,
        out_shape=jax.ShapeDtypeStruct((Bp, Hp), out_dtype),
        grid_spec=pltpu.PrefetchScalarGridSpec(
            num_scalar_prefetch=0,
            grid=(nb, n_chunks),
            in_specs=[
                pl.BlockSpec((TT, TB, M), lambda b, c: (c, b, 0)),   # messages
                pl.BlockSpec((TB, Hp), lambda b, c: (b, 0)),         # h0 (padded)
                pl.BlockSpec((M, 3 * Hp), lambda b, c: (0, 0)),      # W_ih^T
                pl.BlockSpec((Hp, 3 * Hp), lambda b, c: (0, 0)),     # W_hh^T
            ],
            out_specs=pl.BlockSpec((TB, Hp), lambda b, c: (b, 0)),
            scratch_shapes=[
                pltpu.VMEM((TB, Hp), jnp.float32),                   # resident h_t
            ],
        ),
        compiler_params=pltpu.CompilerParams(
            dimension_semantics=("parallel", "arbitrary"),
            vmem_limit_bytes=vmem_limit),
    )(m_pad, h0, wih_t, whh_t)

    return h_final[None, :B, :H]                 # (1, B, H), PyTorch h shape


def _gru_reference(m_v, h_v, w_ih, w_hh):
    """Plain-JAX reference matching torch.nn.GRU (bias=False, 1 layer)."""
    H = h_v.shape[-1]
    h = h_v[0]
    for t in range(m_v.shape[0]):
        x = m_v[t]
        gi = x @ w_ih.T
        gh = h @ w_hh.T
        i_r, i_z, i_n = gi[:, :H], gi[:, H:2 * H], gi[:, 2 * H:]
        h_r, h_z, h_n = gh[:, :H], gh[:, H:2 * H], gh[:, 2 * H:]
        r = jax.nn.sigmoid(i_r + h_r)
        z = jax.nn.sigmoid(i_z + h_z)
        n = jnp.tanh(i_n + r * h_n)
        h = (1.0 - z) * n + z * h
    return h[None]


if __name__ == "__main__":
    # config = {'message_size': M, 'node_feature_size': H}, 1 layer, no bias
    T, B, M, H = 8, 8, 32, 32

    key = jax.random.PRNGKey(0)
    k_m, k_h, k_wih, k_whh = jax.random.split(key, 4)

    m_v = jax.random.normal(k_m, (T, B, M), dtype=jnp.float32)
    h_v = jax.random.normal(k_h, (1, B, H), dtype=jnp.float32)

    # Deterministic init mirroring torch.nn.GRU: U(-1/sqrt(H), 1/sqrt(H))
    bound = 1.0 / jnp.sqrt(jnp.float32(H))
    w_ih = jax.random.uniform(k_wih, (3 * H, M), jnp.float32, -bound, bound)
    w_hh = jax.random.uniform(k_whh, (3 * H, H), jnp.float32, -bound, bound)

    h_out = gru_update(m_v, h_v, w_ih, w_hh)
    h_out = jax.block_until_ready(h_out)

    h_ref = _gru_reference(m_v, h_v, w_ih, w_hh)
    assert h_out.shape == (1, B, H)
    assert h_out.dtype == h_v.dtype
    assert jnp.allclose(h_out, h_ref, atol=1e-5, rtol=1e-5)

    print("KERNEL_OK")
</pallas_src>

<mosaic_0001>
module attributes {stable_mosaic.version = 11 : i64} {
  func.func @_gru_chunk_kernel(%arg0: i32, %arg1: i32, %arg2: memref<8x8x32xf32, #tpu.memory_space<vmem>>, %arg3: memref<8x128xf32, #tpu.memory_space<vmem>>, %arg4: memref<32x384xf32, #tpu.memory_space<vmem>>, %arg5: memref<128x384xf32, #tpu.memory_space<vmem>>, %arg6: memref<8x128xf32, #tpu.memory_space<vmem>>, %arg7: memref<8x128xf32, #tpu.memory_space<vmem>>) attributes {dimension_semantics = [#tpu.dimension_semantics<parallel>, #tpu.dimension_semantics<arbitrary>], iteration_bounds = array<i64: 1, 1>, scalar_prefetch = 0 : i64, scratch_operands = 1 : i64, tpu.core_type = #tpu.core_type<tc>, window_params = [{transform_indices = @transform_0, window_bounds = array<i64: 8, 8, 32>}, {transform_indices = @transform_1, window_bounds = array<i64: 8, 128>}, {pipeline_mode = #tpu.pipeline_mode<synchronous>, transform_indices = @transform_2, window_bounds = array<i64: 32, 384>}, {pipeline_mode = #tpu.pipeline_mode<synchronous>, transform_indices = @transform_3, window_bounds = array<i64: 128, 384>}, {transform_indices = @transform_4, window_bounds = array<i64: 8, 128>}]} {
    %c0_i32 = arith.constant 0 : i32
    %0 = arith.cmpi eq, %arg1, %c0_i32 : i32
    %1 = arith.extui %0 : i1 to i32
    %c0_i32_0 = arith.constant 0 : i32
    %2 = arith.cmpi ne, %1, %c0_i32_0 : i32
    scf.if %2 {
      %c0_96 = arith.constant 0 : index
      %c0_97 = arith.constant 0 : index
      %290 = vector.load %arg3[%c0_96, %c0_97] : memref<8x128xf32, #tpu.memory_space<vmem>>, vector<8x128xf32>
      %c0_98 = arith.constant 0 : index
      %c0_99 = arith.constant 0 : index
      %291 = vector.load %arg7[%c0_98, %c0_99] : memref<8x128xf32, #tpu.memory_space<vmem>>, vector<8x128xf32>
      tpu.vector_store %arg7[%c0_98, %c0_99], %290 {strides = array<i32>} : memref<8x128xf32, #tpu.memory_space<vmem>>, vector<8x128xf32>,
    } else {
    }
    %c8_i32 = arith.constant 8 : i32
    %3 = arith.muli %arg1, %c8_i32 : i32
    %c8_i32_1 = arith.constant 8 : i32
    %4 = arith.subi %c8_i32_1, %3 : i32
    %c0 = arith.constant 0 : index
    %c0_2 = arith.constant 0 : index
    %5 = vector.load %arg7[%c0, %c0_2] : memref<8x128xf32, #tpu.memory_space<vmem>>, vector<8x128xf32>
    %c0_i32_3 = arith.constant 0 : i32
    %6 = arith.index_cast %c0_i32_3 : i32 to index
    %c0_4 = arith.constant 0 : index
    %c0_5 = arith.constant 0 : index
    %7 = vector.load %arg2[%6, %c0_4, %c0_5] : memref<8x8x32xf32, #tpu.memory_space<vmem>>, vector<1x8x32xf32>
    %8 = vector.shape_cast %7 : vector<1x8x32xf32> to vector<8x32xf32>
    %c0_6 = arith.constant 0 : index
    %c0_7 = arith.constant 0 : index
    %9 = vector.load %arg4[%c0_6, %c0_7] : memref<32x384xf32, #tpu.memory_space<vmem>>, vector<32x384xf32>
    %cst = arith.constant dense<0.000000e+00> : vector<8x384xf32>
    %10 = tpu.matmul %8, %9, %cst {dimension_numbers = #tpu.dot_dimension_numbers<[1], [0], [0], [1], [0, 0, 1, 1], [], []>} : vector<8x32xf32>, vector<32x384xf32>, vector<8x384xf32> -> vector<8x384xf32>
    %c0_8 = arith.constant 0 : index
    %c0_9 = arith.constant 0 : index
    %11 = vector.load %arg5[%c0_8, %c0_9] : memref<128x384xf32, #tpu.memory_space<vmem>>, vector<128x384xf32>
    %cst_10 = arith.constant dense<0.000000e+00> : vector<8x384xf32>
    %12 = tpu.matmul %5, %11, %cst_10 {dimension_numbers = #tpu.dot_dimension_numbers<[1], [0], [0], [1], [0, 0, 1, 1], [], []>} : vector<8x128xf32>, vector<128x384xf32>, vector<8x384xf32> -> vector<8x384xf32>
    %13 = vector.extract_strided_slice %10 {offsets = [0, 0], sizes = [8, 128], strides = [1, 1]} : vector<8x384xf32> to vector<8x128xf32>
    %14 = vector.extract_strided_slice %10 {offsets = [0, 128], sizes = [8, 128], strides = [1, 1]} : vector<8x384xf32> to vector<8x128xf32>
    %15 = vector.extract_strided_slice %10 {offsets = [0, 256], sizes = [8, 128], strides = [1, 1]} : vector<8x384xf32> to vector<8x128xf32>
    %16 = vector.extract_strided_slice %12 {offsets = [0, 0], sizes = [8, 128], strides = [1, 1]} : vector<8x384xf32> to vector<8x128xf32>
    %17 = vector.extract_strided_slice %12 {offsets = [0, 128], sizes = [8, 128], strides = [1, 1]} : vector<8x384xf32> to vector<8x128xf32>
    %18 = vector.extract_strided_slice %12 {offsets = [0, 256], sizes = [8, 128], strides = [1, 1]} : vector<8x384xf32> to vector<8x128xf32>
    %19 = arith.addf %13, %16 : vector<8x128xf32>
    %20 = arith.negf %19 : vector<8x128xf32>
    %21 = math.exp %20 : vector<8x128xf32>
    %cst_11 = arith.constant 1.000000e+00 : f32
    %22 = vector.broadcast %cst_11 : f32 to vector<8x128xf32>
    %23 = arith.addf %22, %21 : vector<8x128xf32>
    %24 = arith.divf %22, %23 : vector<8x128xf32>
    %25 = arith.addf %14, %17 : vector<8x128xf32>
    %26 = arith.negf %25 : vector<8x128xf32>
    %27 = math.exp %26 : vector<8x128xf32>
    %cst_12 = arith.constant 1.000000e+00 : f32
    %28 = vector.broadcast %cst_12 : f32 to vector<8x128xf32>
    %29 = arith.addf %28, %27 : vector<8x128xf32>
    %30 = arith.divf %28, %29 : vector<8x128xf32>
    %31 = arith.mulf %24, %18 : vector<8x128xf32>
    %32 = arith.addf %15, %31 : vector<8x128xf32>
    %33 = math.tanh %32 : vector<8x128xf32>
    %cst_13 = arith.constant 1.000000e+00 : f32
    %34 = vector.broadcast %cst_13 : f32 to vector<8x128xf32>
    %35 = arith.subf %34, %30 : vector<8x128xf32>
    %36 = arith.mulf %35, %33 : vector<8x128xf32>
    %37 = arith.mulf %30, %5 : vector<8x128xf32>
    %38 = arith.addf %36, %37 : vector<8x128xf32>
    %39 = arith.cmpi slt, %c0_i32_3, %4 : i32
    %40 = arith.select %39, %38, %5 : vector<8x128xf32>
    %c1_i32 = arith.constant 1 : i32
    %41 = arith.index_cast %c1_i32 : i32 to index
    %c0_14 = arith.constant 0 : index
    %c0_15 = arith.constant 0 : index
    %42 = vector.load %arg2[%41, %c0_14, %c0_15] : memref<8x8x32xf32, #tpu.memory_space<vmem>>, vector<1x8x32xf32>
    %43 = vector.shape_cast %42 : vector<1x8x32xf32> to vector<8x32xf32>
    %c0_16 = arith.constant 0 : index
    %c0_17 = arith.constant 0 : index
    %44 = vector.load %arg4[%c0_16, %c0_17] : memref<32x384xf32, #tpu.memory_space<vmem>>, vector<32x384xf32>
    %cst_18 = arith.constant dense<0.000000e+00> : vector<8x384xf32>
    %45 = tpu.matmul %43, %44, %cst_18 {dimension_numbers = #tpu.dot_dimension_numbers<[1], [0], [0], [1], [0, 0, 1, 1], [], []>} : vector<8x32xf32>, vector<32x384xf32>, vector<8x384xf32> -> vector<8x384xf32>
    %c0_19 = arith.constant 0 : index
    %c0_20 = arith.constant 0 : index
    %46 = vector.load %arg5[%c0_19, %c0_20] : memref<128x384xf32, #tpu.memory_space<vmem>>, vector<128x384xf32>
    %cst_21 = arith.constant dense<0.000000e+00> : vector<8x384xf32>
    %47 = tpu.matmul %40, %46, %cst_21 {dimension_numbers = #tpu.dot_dimension_numbers<[1], [0], [0], [1], [0, 0, 1, 1], [], []>} : vector<8x128xf32>, vector<128x384xf32>, vector<8x384xf32> -> vector<8x384xf32>
    %48 = vector.extract_strided_slice %45 {offsets = [0, 0], sizes = [8, 128], strides = [1, 1]} : vector<8x384xf32> to vector<8x128xf32>
    %49 = vector.extract_strided_slice %45 {offsets = [0, 128], sizes = [8, 128], strides = [1, 1]} : vector<8x384xf32> to vector<8x128xf32>
    %50 = vector.extract_strided_slice %45 {offsets = [0, 256], sizes = [8, 128], strides = [1, 1]} : vector<8x384xf32> to vector<8x128xf32>
    %51 = vector.extract_strided_slice %47 {offsets = [0, 0], sizes = [8, 128], strides = [1, 1]} : vector<8x384xf32> to vector<8x128xf32>
    %52 = vector.extract_strided_slice %47 {offsets = [0, 128], sizes = [8, 128], strides = [1, 1]} : vector<8x384xf32> to vector<8x128xf32>
    %53 = vector.extract_strided_slice %47 {offsets = [0, 256], sizes = [8, 128], strides = [1, 1]} : vector<8x384xf32> to vector<8x128xf32>
    %54 = arith.addf %48, %51 : vector<8x128xf32>
    %55 = arith.negf %54 : vector<8x128xf32>
    %56 = math.exp %55 : vector<8x128xf32>
    %cst_22 = arith.constant 1.000000e+00 : f32
    %57 = vector.broadcast %cst_22 : f32 to vector<8x128xf32>
    %58 = arith.addf %57, %56 : vector<8x128xf32>
    %59 = arith.divf %57, %58 : vector<8x128xf32>
    %60 = arith.addf %49, %52 : vector<8x128xf32>
    %61 = arith.negf %60 : vector<8x128xf32>
    %62 = math.exp %61 : vector<8x128xf32>
    %cst_23 = arith.constant 1.000000e+00 : f32
    %63 = vector.broadcast %cst_23 : f32 to vector<8x128xf32>
    %64 = arith.addf %63, %62 : vector<8x128xf32>
    %65 = arith.divf %63, %64 : vector<8x128xf32>
    %66 = arith.mulf %59, %53 : vector<8x128xf32>
    %67 = arith.addf %50, %66 : vector<8x128xf32>
    %68 = math.tanh %67 : vector<8x128xf32>
    %cst_24 = arith.constant 1.000000e+00 : f32
    %69 = vector.broadcast %cst_24 : f32 to vector<8x128xf32>
    %70 = arith.subf %69, %65 : vector<8x128xf32>
    %71 = arith.mulf %70, %68 : vector<8x128xf32>
    %72 = arith.mulf %65, %40 : vector<8x128xf32>
    %73 = arith.addf %71, %72 : vector<8x128xf32>
    %74 = arith.cmpi slt, %c1_i32, %4 : i32
    %75 = arith.select %74, %73, %40 : vector<8x128xf32>
    %c2_i32 = arith.constant 2 : i32
    %76 = arith.index_cast %c2_i32 : i32 to index
    %c0_25 = arith.constant 0 : index
    %c0_26 = arith.constant 0 : index
    %77 = vector.load %arg2[%76, %c0_25, %c0_26] : memref<8x8x32xf32, #tpu.memory_space<vmem>>, vector<1x8x32xf32>
    %78 = vector.shape_cast %77 : vector<1x8x32xf32> to vector<8x32xf32>
    %c0_27 = arith.constant 0 : index
    %c0_28 = arith.constant 0 : index
    %79 = vector.load %arg4[%c0_27, %c0_28] : memref<32x384xf32, #tpu.memory_space<vmem>>, vector<32x384xf32>
    %cst_29 = arith.constant dense<0.000000e+00> : vector<8x384xf32>
    %80 = tpu.matmul %78, %79, %cst_29 {dimension_numbers = #tpu.dot_dimension_numbers<[1], [0], [0], [1], [0, 0, 1, 1], [], []>} : vector<8x32xf32>, vector<32x384xf32>, vector<8x384xf32> -> vector<8x384xf32>
    %c0_30 = arith.constant 0 : index
    %c0_31 = arith.constant 0 : index
    %81 = vector.load %arg5[%c0_30, %c0_31] : memref<128x384xf32, #tpu.memory_space<vmem>>, vector<128x384xf32>
    %cst_32 = arith.constant dense<0.000000e+00> : vector<8x384xf32>
    %82 = tpu.matmul %75, %81, %cst_32 {dimension_numbers = #tpu.dot_dimension_numbers<[1], [0], [0], [1], [0, 0, 1, 1], [], []>} : vector<8x128xf32>, vector<128x384xf32>, vector<8x384xf32> -> vector<8x384xf32>
    %83 = vector.extract_strided_slice %80 {offsets = [0, 0], sizes = [8, 128], strides = [1, 1]} : vector<8x384xf32> to vector<8x128xf32>
    %84 = vector.extract_strided_slice %80 {offsets = [0, 128], sizes = [8, 128], strides = [1, 1]} : vector<8x384xf32> to vector<8x128xf32>
    %85 = vector.extract_strided_slice %80 {offsets = [0, 256], sizes = [8, 128], strides = [1, 1]} : vector<8x384xf32> to vector<8x128xf32>
    %86 = vector.extract_strided_slice %82 {offsets = [0, 0], sizes = [8, 128], strides = [1, 1]} : vector<8x384xf32> to vector<8x128xf32>
    %87 = vector.extract_strided_slice %82 {offsets = [0, 128], sizes = [8, 128], strides = [1, 1]} : vector<8x384xf32> to vector<8x128xf32>
    %88 = vector.extract_strided_slice %82 {offsets = [0, 256], sizes = [8, 128], strides = [1, 1]} : vector<8x384xf32> to vector<8x128xf32>
    %89 = arith.addf %83, %86 : vector<8x128xf32>
    %90 = arith.negf %89 : vector<8x128xf32>
    %91 = math.exp %90 : vector<8x128xf32>
    %cst_33 = arith.constant 1.000000e+00 : f32
    %92 = vector.broadcast %cst_33 : f32 to vector<8x128xf32>
    %93 = arith.addf %92, %91 : vector<8x128xf32>
    %94 = arith.divf %92, %93 : vector<8x128xf32>
    %95 = arith.addf %84, %87 : vector<8x128xf32>
    %96 = arith.negf %95 : vector<8x128xf32>
    %97 = math.exp %96 : vector<8x128xf32>
    %cst_34 = arith.constant 1.000000e+00 : f32
    %98 = vector.broadcast %cst_34 : f32 to vector<8x128xf32>
    %99 = arith.addf %98, %97 : vector<8x128xf32>
    %100 = arith.divf %98, %99 : vector<8x128xf32>
    %101 = arith.mulf %94, %88 : vector<8x128xf32>
    %102 = arith.addf %85, %101 : vector<8x128xf32>
    %103 = math.tanh %102 : vector<8x128xf32>
    %cst_35 = arith.constant 1.000000e+00 : f32
    %104 = vector.broadcast %cst_35 : f32 to vector<8x128xf32>
    %105 = arith.subf %104, %100 : vector<8x128xf32>
    %106 = arith.mulf %105, %103 : vector<8x128xf32>
    %107 = arith.mulf %100, %75 : vector<8x128xf32>
    %108 = arith.addf %106, %107 : vector<8x128xf32>
    %109 = arith.cmpi slt, %c2_i32, %4 : i32
    %110 = arith.select %109, %108, %75 : vector<8x128xf32>
    %c3_i32 = arith.constant 3 : i32
    %111 = arith.index_cast %c3_i32 : i32 to index
    %c0_36 = arith.constant 0 : index
    %c0_37 = arith.constant 0 : index
    %112 = vector.load %arg2[%111, %c0_36, %c0_37] : memref<8x8x32xf32, #tpu.memory_space<vmem>>, vector<1x8x32xf32>
    %113 = vector.shape_cast %112 : vector<1x8x32xf32> to vector<8x32xf32>
    %c0_38 = arith.constant 0 : index
    %c0_39 = arith.constant 0 : index
    %114 = vector.load %arg4[%c0_38, %c0_39] : memref<32x384xf32, #tpu.memory_space<vmem>>, vector<32x384xf32>
    %cst_40 = arith.constant dense<0.000000e+00> : vector<8x384xf32>
    %115 = tpu.matmul %113, %114, %cst_40 {dimension_numbers = #tpu.dot_dimension_numbers<[1], [0], [0], [1], [0, 0, 1, 1], [], []>} : vector<8x32xf32>, vector<32x384xf32>, vector<8x384xf32> -> vector<8x384xf32>
    %c0_41 = arith.constant 0 : index
    %c0_42 = arith.constant 0 : index
    %116 = vector.load %arg5[%c0_41, %c0_42] : memref<128x384xf32, #tpu.memory_space<vmem>>, vector<128x384xf32>
    %cst_43 = arith.constant dense<0.000000e+00> : vector<8x384xf32>
    %117 = tpu.matmul %110, %116, %cst_43 {dimension_numbers = #tpu.dot_dimension_numbers<[1], [0], [0], [1], [0, 0, 1, 1], [], []>} : vector<8x128xf32>, vector<128x384xf32>, vector<8x384xf32> -> vector<8x384xf32>
    %118 = vector.extract_strided_slice %115 {offsets = [0, 0], sizes = [8, 128], strides = [1, 1]} : vector<8x384xf32> to vector<8x128xf32>
    %119 = vector.extract_strided_slice %115 {offsets = [0, 128], sizes = [8, 128], strides = [1, 1]} : vector<8x384xf32> to vector<8x128xf32>
    %120 = vector.extract_strided_slice %115 {offsets = [0, 256], sizes = [8, 128], strides = [1, 1]} : vector<8x384xf32> to vector<8x128xf32>
    %121 = vector.extract_strided_slice %117 {offsets = [0, 0], sizes = [8, 128], strides = [1, 1]} : vector<8x384xf32> to vector<8x128xf32>
    %122 = vector.extract_strided_slice %117 {offsets = [0, 128], sizes = [8, 128], strides = [1, 1]} : vector<8x384xf32> to vector<8x128xf32>
    %123 = vector.extract_strided_slice %117 {offsets = [0, 256], sizes = [8, 128], strides = [1, 1]} : vector<8x384xf32> to vector<8x128xf32>
    %124 = arith.addf %118, %121 : vector<8x128xf32>
    %125 = arith.negf %124 : vector<8x128xf32>
    %126 = math.exp %125 : vector<8x128xf32>
    %cst_44 = arith.constant 1.000000e+00 : f32
    %127 = vector.broadcast %cst_44 : f32 to vector<8x128xf32>
    %128 = arith.addf %127, %126 : vector<8x128xf32>
    %129 = arith.divf %127, %128 : vector<8x128xf32>
    %130 = arith.addf %119, %122 : vector<8x128xf32>
    %131 = arith.negf %130 : vector<8x128xf32>
    %132 = math.exp %131 : vector<8x128xf32>
    %cst_45 = arith.constant 1.000000e+00 : f32
    %133 = vector.broadcast %cst_45 : f32 to vector<8x128xf32>
    %134 = arith.addf %133, %132 : vector<8x128xf32>
    %135 = arith.divf %133, %134 : vector<8x128xf32>
    %136 = arith.mulf %129, %123 : vector<8x128xf32>
    %137 = arith.addf %120, %136 : vector<8x128xf32>
    %138 = math.tanh %137 : vector<8x128xf32>
    %cst_46 = arith.constant 1.000000e+00 : f32
    %139 = vector.broadcast %cst_46 : f32 to vector<8x128xf32>
    %140 = arith.subf %139, %135 : vector<8x128xf32>
    %141 = arith.mulf %140, %138 : vector<8x128xf32>
    %142 = arith.mulf %135, %110 : vector<8x128xf32>
    %143 = arith.addf %141, %142 : vector<8x128xf32>
    %144 = arith.cmpi slt, %c3_i32, %4 : i32
    %145 = arith.select %144, %143, %110 : vector<8x128xf32>
    %c4_i32 = arith.constant 4 : i32
    %146 = arith.index_cast %c4_i32 : i32 to index
    %c0_47 = arith.constant 0 : index
    %c0_48 = arith.constant 0 : index
    %147 = vector.load %arg2[%146, %c0_47, %c0_48] : memref<8x8x32xf32, #tpu.memory_space<vmem>>, vector<1x8x32xf32>
    %148 = vector.shape_cast %147 : vector<1x8x32xf32> to vector<8x32xf32>
    %c0_49 = arith.constant 0 : index
    %c0_50 = arith.constant 0 : index
    %149 = vector.load %arg4[%c0_49, %c0_50] : memref<32x384xf32, #tpu.memory_space<vmem>>, vector<32x384xf32>
    %cst_51 = arith.constant dense<0.000000e+00> : vector<8x384xf32>
    %150 = tpu.matmul %148, %149, %cst_51 {dimension_numbers = #tpu.dot_dimension_numbers<[1], [0], [0], [1], [0, 0, 1, 1], [], []>} : vector<8x32xf32>, vector<32x384xf32>, vector<8x384xf32> -> vector<8x384xf32>
    %c0_52 = arith.constant 0 : index
    %c0_53 = arith.constant 0 : index
    %151 = vector.load %arg5[%c0_52, %c0_53] : memref<128x384xf32, #tpu.memory_space<vmem>>, vector<128x384xf32>
    %cst_54 = arith.constant dense<0.000000e+00> : vector<8x384xf32>
    %152 = tpu.matmul %145, %151, %cst_54 {dimension_numbers = #tpu.dot_dimension_numbers<[1], [0], [0], [1], [0, 0, 1, 1], [], []>} : vector<8x128xf32>, vector<128x384xf32>, vector<8x384xf32> -> vector<8x384xf32>
    %153 = vector.extract_strided_slice %150 {offsets = [0, 0], sizes = [8, 128], strides = [1, 1]} : vector<8x384xf32> to vector<8x128xf32>
    %154 = vector.extract_strided_slice %150 {offsets = [0, 128], sizes = [8, 128], strides = [1, 1]} : vector<8x384xf32> to vector<8x128xf32>
    %155 = vector.extract_strided_slice %150 {offsets = [0, 256], sizes = [8, 128], strides = [1, 1]} : vector<8x384xf32> to vector<8x128xf32>
    %156 = vector.extract_strided_slice %152 {offsets = [0, 0], sizes = [8, 128], strides = [1, 1]} : vector<8x384xf32> to vector<8x128xf32>
    %157 = vector.extract_strided_slice %152 {offsets = [0, 128], sizes = [8, 128], strides = [1, 1]} : vector<8x384xf32> to vector<8x128xf32>
    %158 = vector.extract_strided_slice %152 {offsets = [0, 256], sizes = [8, 128], strides = [1, 1]} : vector<8x384xf32> to vector<8x128xf32>
    %159 = arith.addf %153, %156 : vector<8x128xf32>
    %160 = arith.negf %159 : vector<8x128xf32>
    %161 = math.exp %160 : vector<8x128xf32>
    %cst_55 = arith.constant 1.000000e+00 : f32
    %162 = vector.broadcast %cst_55 : f32 to vector<8x128xf32>
    %163 = arith.addf %162, %161 : vector<8x128xf32>
    %164 = arith.divf %162, %163 : vector<8x128xf32>
    %165 = arith.addf %154, %157 : vector<8x128xf32>
    %166 = arith.negf %165 : vector<8x128xf32>
    %167 = math.exp %166 : vector<8x128xf32>
    %cst_56 = arith.constant 1.000000e+00 : f32
    %168 = vector.broadcast %cst_56 : f32 to vector<8x128xf32>
    %169 = arith.addf %168, %167 : vector<8x128xf32>
    %170 = arith.divf %168, %169 : vector<8x128xf32>
    %171 = arith.mulf %164, %158 : vector<8x128xf32>
    %172 = arith.addf %155, %171 : vector<8x128xf32>
    %173 = math.tanh %172 : vector<8x128xf32>
    %cst_57 = arith.constant 1.000000e+00 : f32
    %174 = vector.broadcast %cst_57 : f32 to vector<8x128xf32>
    %175 = arith.subf %174, %170 : vector<8x128xf32>
    %176 = arith.mulf %175, %173 : vector<8x128xf32>
    %177 = arith.mulf %170, %145 : vector<8x128xf32>
    %178 = arith.addf %176, %177 : vector<8x128xf32>
    %179 = arith.cmpi slt, %c4_i32, %4 : i32
    %180 = arith.select %179, %178, %145 : vector<8x128xf32>
    %c5_i32 = arith.constant 5 : i32
    %181 = arith.index_cast %c5_i32 : i32 to index
    %c0_58 = arith.constant 0 : index
    %c0_59 = arith.constant 0 : index
    %182 = vector.load %arg2[%181, %c0_58, %c0_59] : memref<8x8x32xf32, #tpu.memory_space<vmem>>, vector<1x8x32xf32>
    %183 = vector.shape_cast %182 : vector<1x8x32xf32> to vector<8x32xf32>
    %c0_60 = arith.constant 0 : index
    %c0_61 = arith.constant 0 : index
    %184 = vector.load %arg4[%c0_60, %c0_61] : memref<32x384xf32, #tpu.memory_space<vmem>>, vector<32x384xf32>
    %cst_62 = arith.constant dense<0.000000e+00> : vector<8x384xf32>
    %185 = tpu.matmul %183, %184, %cst_62 {dimension_numbers = #tpu.dot_dimension_numbers<[1], [0], [0], [1], [0, 0, 1, 1], [], []>} : vector<8x32xf32>, vector<32x384xf32>, vector<8x384xf32> -> vector<8x384xf32>
    %c0_63 = arith.constant 0 : index
    %c0_64 = arith.constant 0 : index
    %186 = vector.load %arg5[%c0_63, %c0_64] : memref<128x384xf32, #tpu.memory_space<vmem>>, vector<128x384xf32>
    %cst_65 = arith.constant dense<0.000000e+00> : vector<8x384xf32>
    %187 = tpu.matmul %180, %186, %cst_65 {dimension_numbers = #tpu.dot_dimension_numbers<[1], [0], [0], [1], [0, 0, 1, 1], [], []>} : vector<8x128xf32>, vector<128x384xf32>, vector<8x384xf32> -> vector<8x384xf32>
    %188 = vector.extract_strided_slice %185 {offsets = [0, 0], sizes = [8, 128], strides = [1, 1]} : vector<8x384xf32> to vector<8x128xf32>
    %189 = vector.extract_strided_slice %185 {offsets = [0, 128], sizes = [8, 128], strides = [1, 1]} : vector<8x384xf32> to vector<8x128xf32>
    %190 = vector.extract_strided_slice %185 {offsets = [0, 256], sizes = [8, 128], strides = [1, 1]} : vector<8x384xf32> to vector<8x128xf32>
    %191 = vector.extract_strided_slice %187 {offsets = [0, 0], sizes = [8, 128], strides = [1, 1]} : vector<8x384xf32> to vector<8x128xf32>
    %192 = vector.extract_strided_slice %187 {offsets = [0, 128], sizes = [8, 128], strides = [1, 1]} : vector<8x384xf32> to vector<8x128xf32>
    %193 = vector.extract_strided_slice %187 {offsets = [0, 256], sizes = [8, 128], strides = [1, 1]} : vector<8x384xf32> to vector<8x128xf32>
    %194 = arith.addf %188, %191 : vector<8x128xf32>
    %195 = arith.negf %194 : vector<8x128xf32>
    %196 = math.exp %195 : vector<8x128xf32>
    %cst_66 = arith.constant 1.000000e+00 : f32
    %197 = vector.broadcast %cst_66 : f32 to vector<8x128xf32>
    %198 = arith.addf %197, %196 : vector<8x128xf32>
    %199 = arith.divf %197, %198 : vector<8x128xf32>
    %200 = arith.addf %189, %192 : vector<8x128xf32>
    %201 = arith.negf %200 : vector<8x128xf32>
    %202 = math.exp %201 : vector<8x128xf32>
    %cst_67 = arith.constant 1.000000e+00 : f32
    %203 = vector.broadcast %cst_67 : f32 to vector<8x128xf32>
    %204 = arith.addf %203, %202 : vector<8x128xf32>
    %205 = arith.divf %203, %204 : vector<8x128xf32>
    %206 = arith.mulf %199, %193 : vector<8x128xf32>
    %207 = arith.addf %190, %206 : vector<8x128xf32>
    %208 = math.tanh %207 : vector<8x128xf32>
    %cst_68 = arith.constant 1.000000e+00 : f32
    %209 = vector.broadcast %cst_68 : f32 to vector<8x128xf32>
    %210 = arith.subf %209, %205 : vector<8x128xf32>
    %211 = arith.mulf %210, %208 : vector<8x128xf32>
    %212 = arith.mulf %205, %180 : vector<8x128xf32>
    %213 = arith.addf %211, %212 : vector<8x128xf32>
    %214 = arith.cmpi slt, %c5_i32, %4 : i32
    %215 = arith.select %214, %213, %180 : vector<8x128xf32>
    %c6_i32 = arith.constant 6 : i32
    %216 = arith.index_cast %c6_i32 : i32 to index
    %c0_69 = arith.constant 0 : index
    %c0_70 = arith.constant 0 : index
    %217 = vector.load %arg2[%216, %c0_69, %c0_70] : memref<8x8x32xf32, #tpu.memory_space<vmem>>, vector<1x8x32xf32>
    %218 = vector.shape_cast %217 : vector<1x8x32xf32> to vector<8x32xf32>
    %c0_71 = arith.constant 0 : index
    %c0_72 = arith.constant 0 : index
    %219 = vector.load %arg4[%c0_71, %c0_72] : memref<32x384xf32, #tpu.memory_space<vmem>>, vector<32x384xf32>
    %cst_73 = arith.constant dense<0.000000e+00> : vector<8x384xf32>
    %220 = tpu.matmul %218, %219, %cst_73 {dimension_numbers = #tpu.dot_dimension_numbers<[1], [0], [0], [1], [0, 0, 1, 1], [], []>} : vector<8x32xf32>, vector<32x384xf32>, vector<8x384xf32> -> vector<8x384xf32>
    %c0_74 = arith.constant 0 : index
    %c0_75 = arith.constant 0 : index
    %221 = vector.load %arg5[%c0_74, %c0_75] : memref<128x384xf32, #tpu.memory_space<vmem>>, vector<128x384xf32>
    %cst_76 = arith.constant dense<0.000000e+00> : vector<8x384xf32>
    %222 = tpu.matmul %215, %221, %cst_76 {dimension_numbers = #tpu.dot_dimension_numbers<[1], [0], [0], [1], [0, 0, 1, 1], [], []>} : vector<8x128xf32>, vector<128x384xf32>, vector<8x384xf32> -> vector<8x384xf32>
    %223 = vector.extract_strided_slice %220 {offsets = [0, 0], sizes = [8, 128], strides = [1, 1]} : vector<8x384xf32> to vector<8x128xf32>
    %224 = vector.extract_strided_slice %220 {offsets = [0, 128], sizes = [8, 128], strides = [1, 1]} : vector<8x384xf32> to vector<8x128xf32>
    %225 = vector.extract_strided_slice %220 {offsets = [0, 256], sizes = [8, 128], strides = [1, 1]} : vector<8x384xf32> to vector<8x128xf32>
    %226 = vector.extract_strided_slice %222 {offsets = [0, 0], sizes = [8, 128], strides = [1, 1]} : vector<8x384xf32> to vector<8x128xf32>
    %227 = vector.extract_strided_slice %222 {offsets = [0, 128], sizes = [8, 128], strides = [1, 1]} : vector<8x384xf32> to vector<8x128xf32>
    %228 = vector.extract_strided_slice %222 {offsets = [0, 256], sizes = [8, 128], strides = [1, 1]} : vector<8x384xf32> to vector<8x128xf32>
    %229 = arith.addf %223, %226 : vector<8x128xf32>
    %230 = arith.negf %229 : vector<8x128xf32>
    %231 = math.exp %230 : vector<8x128xf32>
    %cst_77 = arith.constant 1.000000e+00 : f32
    %232 = vector.broadcast %cst_77 : f32 to vector<8x128xf32>
    %233 = arith.addf %232, %231 : vector<8x128xf32>
    %234 = arith.divf %232, %233 : vector<8x128xf32>
    %235 = arith.addf %224, %227 : vector<8x128xf32>
    %236 = arith.negf %235 : vector<8x128xf32>
    %237 = math.exp %236 : vector<8x128xf32>
    %cst_78 = arith.constant 1.000000e+00 : f32
    %238 = vector.broadcast %cst_78 : f32 to vector<8x128xf32>
    %239 = arith.addf %238, %237 : vector<8x128xf32>
    %240 = arith.divf %238, %239 : vector<8x128xf32>
    %241 = arith.mulf %234, %228 : vector<8x128xf32>
    %242 = arith.addf %225, %241 : vector<8x128xf32>
    %243 = math.tanh %242 : vector<8x128xf32>
    %cst_79 = arith.constant 1.000000e+00 : f32
    %244 = vector.broadcast %cst_79 : f32 to vector<8x128xf32>
    %245 = arith.subf %244, %240 : vector<8x128xf32>
    %246 = arith.mulf %245, %243 : vector<8x128xf32>
    %247 = arith.mulf %240, %215 : vector<8x128xf32>
    %248 = arith.addf %246, %247 : vector<8x128xf32>
    %249 = arith.cmpi slt, %c6_i32, %4 : i32
    %250 = arith.select %249, %248, %215 : vector<8x128xf32>
    %c7_i32 = arith.constant 7 : i32
    %251 = arith.index_cast %c7_i32 : i32 to index
    %c0_80 = arith.constant 0 : index
    %c0_81 = arith.constant 0 : index
    %252 = vector.load %arg2[%251, %c0_80, %c0_81] : memref<8x8x32xf32, #tpu.memory_space<vmem>>, vector<1x8x32xf32>
    %253 = vector.shape_cast %252 : vector<1x8x32xf32> to vector<8x32xf32>
    %c0_82 = arith.constant 0 : index
    %c0_83 = arith.constant 0 : index
    %254 = vector.load %arg4[%c0_82, %c0_83] : memref<32x384xf32, #tpu.memory_space<vmem>>, vector<32x384xf32>
    %cst_84 = arith.constant dense<0.000000e+00> : vector<8x384xf32>
    %255 = tpu.matmul %253, %254, %cst_84 {dimension_numbers = #tpu.dot_dimension_numbers<[1], [0], [0], [1], [0, 0, 1, 1], [], []>} : vector<8x32xf32>, vector<32x384xf32>, vector<8x384xf32> -> vector<8x384xf32>
    %c0_85 = arith.constant 0 : index
    %c0_86 = arith.constant 0 : index
    %256 = vector.load %arg5[%c0_85, %c0_86] : memref<128x384xf32, #tpu.memory_space<vmem>>, vector<128x384xf32>
    %cst_87 = arith.constant dense<0.000000e+00> : vector<8x384xf32>
    %257 = tpu.matmul %250, %256, %cst_87 {dimension_numbers = #tpu.dot_dimension_numbers<[1], [0], [0], [1], [0, 0, 1, 1], [], []>} : vector<8x128xf32>, vector<128x384xf32>, vector<8x384xf32> -> vector<8x384xf32>
    %258 = vector.extract_strided_slice %255 {offsets = [0, 0], sizes = [8, 128], strides = [1, 1]} : vector<8x384xf32> to vector<8x128xf32>
    %259 = vector.extract_strided_slice %255 {offsets = [0, 128], sizes = [8, 128], strides = [1, 1]} : vector<8x384xf32> to vector<8x128xf32>
    %260 = vector.extract_strided_slice %255 {offsets = [0, 256], sizes = [8, 128], strides = [1, 1]} : vector<8x384xf32> to vector<8x128xf32>
    %261 = vector.extract_strided_slice %257 {offsets = [0, 0], sizes = [8, 128], strides = [1, 1]} : vector<8x384xf32> to vector<8x128xf32>
    %262 = vector.extract_strided_slice %257 {offsets = [0, 128], sizes = [8, 128], strides = [1, 1]} : vector<8x384xf32> to vector<8x128xf32>
    %263 = vector.extract_strided_slice %257 {offsets = [0, 256], sizes = [8, 128], strides = [1, 1]} : vector<8x384xf32> to vector<8x128xf32>
    %264 = arith.addf %258, %261 : vector<8x128xf32>
    %265 = arith.negf %264 : vector<8x128xf32>
    %266 = math.exp %265 : vector<8x128xf32>
    %cst_88 = arith.constant 1.000000e+00 : f32
    %267 = vector.broadcast %cst_88 : f32 to vector<8x128xf32>
    %268 = arith.addf %267, %266 : vector<8x128xf32>
    %269 = arith.divf %267, %268 : vector<8x128xf32>
    %270 = arith.addf %259, %262 : vector<8x128xf32>
    %271 = arith.negf %270 : vector<8x128xf32>
    %272 = math.exp %271 : vector<8x128xf32>
    %cst_89 = arith.constant 1.000000e+00 : f32
    %273 = vector.broadcast %cst_89 : f32 to vector<8x128xf32>
    %274 = arith.addf %273, %272 : vector<8x128xf32>
    %275 = arith.divf %273, %274 : vector<8x128xf32>
    %276 = arith.mulf %269, %263 : vector<8x128xf32>
    %277 = arith.addf %260, %276 : vector<8x128xf32>
    %278 = math.tanh %277 : vector<8x128xf32>
    %cst_90 = arith.constant 1.000000e+00 : f32
    %279 = vector.broadcast %cst_90 : f32 to vector<8x128xf32>
    %280 = arith.subf %279, %275 : vector<8x128xf32>
    %281 = arith.mulf %280, %278 : vector<8x128xf32>
    %282 = arith.mulf %275, %250 : vector<8x128xf32>
    %283 = arith.addf %281, %282 : vector<8x128xf32>
    %284 = arith.cmpi slt, %c7_i32, %4 : i32
    %285 = arith.select %284, %283, %250 : vector<8x128xf32>
    %c8_i32_91 = arith.constant 8 : i32
    %c0_92 = arith.constant 0 : index
    %c0_93 = arith.constant 0 : index
    %286 = vector.load %arg7[%c0_92, %c0_93] : memref<8x128xf32, #tpu.memory_space<vmem>>, vector<8x128xf32>
    tpu.vector_store %arg7[%c0_92, %c0_93], %285 {strides = array<i32>} : memref<8x128xf32, #tpu.memory_space<vmem>>, vector<8x128xf32>,
    %c0_i32_94 = arith.constant 0 : i32
    %287 = arith.cmpi eq, %arg1, %c0_i32_94 : i32
    %288 = arith.extui %287 : i1 to i32
    %c0_i32_95 = arith.constant 0 : i32
    %289 = arith.cmpi ne, %288, %c0_i32_95 : i32
    scf.if %289 {
      %c0_96 = arith.constant 0 : index
      %c0_97 = arith.constant 0 : index
      %290 = vector.load %arg6[%c0_96, %c0_97] : memref<8x128xf32, #tpu.memory_space<vmem>>, vector<8x128xf32>
      tpu.vector_store %arg6[%c0_96, %c0_97], %285 {strides = array<i32>} : memref<8x128xf32, #tpu.memory_space<vmem>>, vector<8x128xf32>,
    } else {
    }
    return
  }
  func.func @transform_0(%arg0: i32, %arg1: i32) -> (i32, i32, i32) {
    %c0_i32 = arith.constant 0 : i32
    %c0_i32_0 = arith.constant 0 : i32
    return %arg1, %arg0, %c0_i32 : i32, i32, i32
  }
  func.func @transform_1(%arg0: i32, %arg1: i32) -> (i32, i32) {
    %c0_i32 = arith.constant 0 : i32
    %c0_i32_0 = arith.constant 0 : i32
    return %arg0, %c0_i32 : i32, i32
  }
  func.func @transform_2(%arg0: i32, %arg1: i32) -> (i32, i32) {
    %c0_i32 = arith.constant 0 : i32
    %c0_i32_0 = arith.constant 0 : i32
    %c0_i32_1 = arith.constant 0 : i32
    return %c0_i32, %c0_i32_0 : i32, i32
  }
  func.func @transform_3(%arg0: i32, %arg1: i32) -> (i32, i32) {
    %c0_i32 = arith.constant 0 : i32
    %c0_i32_0 = arith.constant 0 : i32
    %c0_i32_1 = arith.constant 0 : i32
    return %c0_i32, %c0_i32_0 : i32, i32
  }
  func.func @transform_4(%arg0: i32, %arg1: i32) -> (i32, i32) {
    %c0_i32 = arith.constant 0 : i32
    %c0_i32_0 = arith.constant 0 : i32
    return %arg0, %c0_i32 : i32, i32
  }
}

</mosaic_0001>

<bundles_post_ra>
// kernel: tpu_custom_call.1
= control target key start
LH: loop header
LB: loop body
LE: loop exit
PB: predicated region body
PF: predicated region fallthrough
CT: control target
= control target key end

     0   :  { %9 = vsyncpa [#allocation4], 0  ;;  %s4611_s0 = inlined_call_operand.hbm [shape: f32[8,8,32], index: 0, kind: input, shape index: {}]   ;;  %s4612_s1 = inlined_call_operand.hbm [shape: f32[8,128], index: 1, kind: input, shape index: {}]   ;;  %s4613_s2 = inlined_call_operand.hbm [shape: f32[32,384], index: 2, kind: input, shape index: {}]   ;;  %s4614_s3 = inlined_call_operand.hbm [shape: f32[128,384], index: 3, kind: input, shape index: {}]   ;;  %s4615_s4 = inlined_call_operand.hbm [shape: f32[8,128], index: 4, kind: output, shape index: {}]  }
   0x1   :  { %10 = vsyncpa [#allocation7], 0 }
   0x2   :  { %11 = vsyncpa [#allocation10], 0 }
   0x3   :  { %12 = vsyncpa [#allocation5], 0  ;;  %s4028_s15 = smov [#allocation6]   ;;  %s4029_s17 = smov [#allocation3]  }
   0x4   :  { %s31_s16 = sshll.u32 %s4028_s15, 4  ;;  %s18_s18 = sshll.u32 %s4029_s17, 4  ;;  %s32_s16 = int_to_ptr.vmem [resolvable:$true] %s31_s16  ;;  %s4065_s18 = int_to_ptr.vmem [resolvable:$true] %s18_s18 }
   0x5   :  { %s3910_s21 = scalar_lea.hbm %s4612_s1, 128 }
   0x6   :  { %p3911_p0 = scmp.ne.s32.totalorder %s4612_s1, %s3910_s21  ;;  %p3914_p1 = scmp.lt.u32.totalorder %s3910_s21, %s4612_s1 }
   0x8   :  { %p3916_p2 = pnand %p3914_p1, %p3911_p0 }
   0xa   :  { %3919 = shalt.err (!%p3916_p2)
}
   0xb   :  { %s3920_s26 = scalar_lea.vmem %s32_s16, 128  ;;  %p3925_p4 = scmp.lt.s32.totalorder %s32_s16, %s32_s16 }
   0xc   :  { %p3921_p3 = scmp.ne.s32.totalorder %s32_s16, %s3920_s26  ;;  %p3926_p5 = scmp.lt.s32.totalorder %s3920_s26, %s3920_s26 }
   0xe   :  { %p3927_p6 = por %p3926_p5, %p3925_p4 }
  0x10   :  { %p3928_p7 = pnand %p3927_p6, %p3921_p3 }
  0x12   :  { %3931 = shalt.err (!%p3928_p7)
}
  0x13   :  { %34 = dma.hbm_to_vmem [thread:$0]  %s4612_s1, 128, %s32_s16, [#allocation7]  }
  0x14   :  { %s3932_s5 = scalar_lea.hbm %s4611_s0, 1024 }
  0x15   :  { %p3933_p8 = scmp.ne.s32.totalorder %s4611_s0, %s3932_s5  ;;  %p3936_p9 = scmp.lt.u32.totalorder %s3932_s5, %s4611_s0 }
  0x17   :  { %p3938_p10 = pnand %p3936_p9, %p3933_p8 }
  0x19   :  { %3941 = shalt.err (!%p3938_p10)
}
  0x1a   :  { %s3942_s10 = scalar_lea.vmem %s4065_s18, 1024  ;;  %p3947_p12 = scmp.lt.s32.totalorder %s4065_s18, %s4065_s18 }
  0x1b   :  { %p3943_p11 = scmp.ne.s32.totalorder %s4065_s18, %s3942_s10  ;;  %p3948_p13 = scmp.lt.s32.totalorder %s3942_s10, %s3942_s10 }
  0x1d   :  { %p3949_p0 = por %p3948_p13, %p3947_p12 }
  0x1f   :  { %p3950_p1 = pnand %p3949_p0, %p3943_p11 }
  0x21   :  { %3953 = shalt.err (!%p3950_p1)
}
  0x22   :  { %s4030_s1 = smov 128   ;;  %s4031_s11 = smov 8  }
  0x23   :  { %24 = dma.hbm_to_vmem [thread:$0]  %s4611_s0, 1024, %s4065_s18, [#allocation4], %s4030_s1, %s4030_s1, %s4031_s11  }
  0x24   :  { %s4032_s14 = smov [#allocation8]   ;;  %s3954_s19 = scalar_lea.hbm %s4613_s2, 1536 }
  0x25   :  { %s40_s15 = sshll.u32 %s4032_s14, 4  ;;  %p3955_p2 = scmp.ne.s32.totalorder %s4613_s2, %s3954_s19  ;;  %s41_s15 = int_to_ptr.vmem [resolvable:$true] %s40_s15 }
  0x26   :  { %p3958_p3 = scmp.lt.u32.totalorder %s3954_s19, %s4613_s2 }
  0x28   :  { %p3960_p4 = pnand %p3958_p3, %p3955_p2 }
  0x2a   :  { %3963 = shalt.err (!%p3960_p4)
}
  0x2b   :  { %s3964_s24 = scalar_lea.vmem %s41_s15, 1536  ;;  %p3969_p6 = scmp.lt.s32.totalorder %s41_s15, %s41_s15 }
  0x2c   :  { %p3965_p5 = scmp.ne.s32.totalorder %s41_s15, %s3964_s24  ;;  %p3970_p7 = scmp.lt.s32.totalorder %s3964_s24, %s3964_s24 }
  0x2e   :  { %p3971_p8 = por %p3970_p7, %p3969_p6 }
  0x30   :  { %p3972_p9 = pnand %p3971_p8, %p3965_p5 }
  0x32   :  { %3975 = shalt.err (!%p3972_p9)
}
  0x33   :  { %s4033_s0 = smov 384   ;;  %s4034_s18 = smov 24  }
  0x34   :  { %46 = dma.hbm_to_vmem [thread:$0]  %s4613_s2, 1536, %s41_s15, [#allocation7], %s4033_s0, %s4033_s0, %s4034_s18  }
  0x35   :  { %s4035_s27 = smov [#allocation9]   ;;  %s3976_s5 = scalar_lea.hbm %s4614_s3, 6144 }
  0x36   :  { %s52_s28 = sshll.u32 %s4035_s27, 4  ;;  %p3977_p10 = scmp.ne.s32.totalorder %s4614_s3, %s3976_s5  ;;  %s53_s28 = int_to_ptr.vmem [resolvable:$true] %s52_s28 }
  0x37   :  { %p3980_p11 = scmp.lt.u32.totalorder %s3976_s5, %s4614_s3 }
  0x39   :  { %p3982_p12 = pnand %p3980_p11, %p3977_p10 }
  0x3b   :  { %3985 = shalt.err (!%p3982_p12)
}
  0x3c   :  { %s3986_s10 = scalar_lea.vmem %s53_s28, 6144  ;;  %p3991_p0 = scmp.lt.s32.totalorder %s53_s28, %s53_s28 }
  0x3d   :  { %p3987_p13 = scmp.ne.s32.totalorder %s53_s28, %s3986_s10  ;;  %p3992_p1 = scmp.lt.s32.totalorder %s3986_s10, %s3986_s10 }
  0x3f   :  { %p3993_p2 = por %p3992_p1, %p3991_p0 }
  0x41   :  { %p3994_p3 = pnand %p3993_p2, %p3987_p13 }
  0x43   :  { %3997 = shalt.err (!%p3994_p3)
}
  0x44   :  { %58 = dma.hbm_to_vmem [thread:$0]  %s4614_s3, 6144, %s53_s28, [#allocation10], %s4033_s0, %s4033_s0, %s4034_s18  }
  0x45   :  { %4020 = dma.done.wait [#allocation4], 1024  }
  0x46   :  { %4021 = vsyncadd [#allocation4], 4294966272 }
  0x47   :  { %4022 = dma.done.wait [#allocation7], 1664  }
  0x48   :  { %4023 = vsyncadd [#allocation7], 4294965632 }
  0x49   :  { %4024 = dma.done.wait [#allocation10], 6144  }
  0x4a   :  { %4025 = vsyncadd [#allocation10], 4294961152  ;;  %v4036_v0 = vmov 0.0   ;;  %v4037_v1 = vmov 0.0|0.0   ;;  %vm4038_vm0 = vmmov 0   ;;  %v82_v2 = vld [vmem:[#allocation8 + $0x8] sm:$0xff] }
  0x4b   :  { %161 = vmatprep.mubr.f32.mxu0 %v4036_v0  ;;  %3250 = vmatprep.subr.bf16.mxu1 %v4037_v1  ;;  %v85_v3 = vld [vmem:[#allocation8 + $0x20] sm:$0xff]  ;;  %v84_v6 = vld [vmem:[#allocation8 + $0x18] sm:$0xff]  ;;  %v91_v8 = vld [vmem:[#allocation8 + $0x50] sm:$0xff]  ;;  %vm93_vm1 = vcmask 261120   ;;  %s4039_s3 = smov [#allocation11]  }
  0x4c   :  { %2882 = vmatprep.mubr.msk.f32.mxu1 %vm4038_vm0, %v4036_v0  ;;  %v81_v4 = vld [vmem:[#allocation8] sm:$0xff]  ;;  %v4124_v5 = vpack.c.bf16 %v85_v3, %v82_v2  ;;  %v88_v7 = vld [vmem:[#allocation8 + $0x38] sm:$0xff]  ;;  %v87_v11 = vld [vmem:[#allocation8 + $0x30] sm:$0xff]  ;;  %s2655_s11 = sshll.u32 %s4039_s3, 4  ;;  %s2656_s11 = int_to_ptr.vmem [resolvable:$true] %s2655_s11 }
  0x4d   :  { %v4126_v9 = vpack.c.bf16 %v84_v6, %v81_v4  ;;  %v4128_v10 = vpack.c.bf16 %v91_v8, %v88_v7  ;;  %v90_v12 = vld [vmem:[#allocation8 + $0x48] sm:$0xff]  ;;  %v242_v14 = vld [vmem:[#allocation9 + $0x20] sm:$0xff]  ;;  %v241_v18 = vld [vmem:[#allocation9 + $0x18] sm:$0xff]  ;;  %s3998_s12 = scalar_lea.vmem %s2656_s11, 128  ;;  %p4003_p5 = scmp.lt.s32.totalorder %s2656_s11, %s2656_s11 }
  0x4e   :  { %v239_v13 = vld [vmem:[#allocation9 + $0x8] sm:$0xff]  ;;  %3243 = vmatprep.subr.bf16.mxu0 %v4124_v5  ;;  %v4132_v15 = vpack.c.bf16 %v90_v12, %v87_v11  ;;  %v238_v17 = vld [vmem:[#allocation9] sm:$0xff]  ;;  %v245_v19 = vld [vmem:[#allocation9 + $0x38] sm:$0xff]  ;;  %p3999_p4 = scmp.ne.s32.totalorder %s2656_s11, %s3998_s12  ;;  %p4004_p6 = scmp.lt.s32.totalorder %s3998_s12, %s3998_s12 }
  0x4f   :  { %3245 = vmatpush1.bf16.msra.mxu0 %v4126_v9  ;;  %v4135_v16 = vpack.c.bf16 %v242_v14, %v239_v13  ;;  %v248_v20 = vld [vmem:[#allocation9 + $0x50] sm:$0xff]  ;;  %v80_v21 = vld [vmem:[#allocation3] sm:$0xff]  ;;  %v4138_v22 = vpack.c.bf16 %v241_v18, %v238_v17  ;;  %v247_v25 = vld [vmem:[#allocation9 + $0x48] sm:$0xff] }
  0x50   :  { %3247 = vmatprep.subr.bf16.mxu0 %v4128_v10  ;;  %v4141_v23 = vpack.c.bf16 %v248_v20, %v245_v19  ;;  %v244_v24 = vld [vmem:[#allocation9 + $0x30] sm:$0xff]  ;;  %v251_v27 = vld [vmem:[#allocation9 + $0x68] sm:$0xff]  ;;  %v254_v28 = vld [vmem:[#allocation9 + $0x80] sm:$0xff]  ;;  %p4005_p7 = por %p4004_p6, %p4003_p5 }
  0x51   :  { %v83_v26 = vld [vmem:[#allocation8 + $0x10] sm:$0xff]  ;;  %v86_v29 = vld [vmem:[#allocation8 + $0x28] sm:$0xff]  ;;  %v89_v31 = vld [vmem:[#allocation8 + $0x40] sm:$0xff]  ;;  %v4147_v32 = vpack.c.bf16 %v247_v25, %v244_v24  ;;  %v4151_v34 = vpack.c.bf16 %v254_v28, %v251_v27 }
  0x52   :  { %v4144_v30 = vpack.c.bf16 %v86_v29, %v83_v26  ;;  %v92_v33 = vld [vmem:[#allocation8 + $0x58] sm:$0xff]  ;;  %v250_v35 = vld [vmem:[#allocation9 + $0x60] sm:$0xff]  ;;  %v260_v39 = vld [vmem:[#allocation9 + $0xb0] sm:$0xff]  ;;  %p4006_p8 = pnand %p4005_p7, %p3999_p4 }
  0x53   :  { %3249 = vmatpush1.bf16.msra.mxu0 %v4132_v15  ;;  %v253_v36 = vld [vmem:[#allocation9 + $0x78] sm:$0xff]  ;;  %v4154_v38 = vpack.c.bf16 %v92_v33, %v89_v31  ;;  %v240_v40 = vld [vmem:[#allocation9 + $0x10] sm:$0xff]  ;;  %v243_v41 = vld [vmem:[#allocation9 + $0x28] sm:$0xff] }
  0x54   :  { %3257 = vmatprep.subr.bf16.mxu0 %v4135_v16  ;;  %v257_v37 = vld [vmem:[#allocation9 + $0x98] sm:$0xff]  ;;  %3252 = vmatpush3.bf16.msra.mxu1 %v4144_v30  ;;  %v4158_v42 = vpack.c.bf16 %v253_v36, %v250_v35  ;;  %v256_v44 = vld [vmem:[#allocation9 + $0x90] sm:$0xff]  ;;  %v259_v45 = vld [vmem:[#allocation9 + $0xa8] sm:$0xff]  ;;  %v4164_v47 = vpack.c.bf16 %v243_v41, %v240_v40 }
  0x55   :  { %3253 = vmatprep.subr.bf16.mxu1 %v4037_v1  ;;  %v4161_v43 = vpack.c.bf16 %v260_v39, %v257_v37  ;;  %v263_v46 = vld [vmem:[#allocation9 + $0xc8] sm:$0xff]  ;;  %v266_v48 = vld [vmem:[#allocation9 + $0xe0] sm:$0xff]  ;;  %v249_v50 = vld [vmem:[#allocation9 + $0x58] sm:$0xff]  ;;  %v4168_v51 = vpack.c.bf16 %v259_v45, %v256_v44 }
  0x56   :  { %2666 = vmatmul.mubr.msk.f32.vlgmr.msra.gmra.mrb[0].mxu0 %vm93_vm1, %v80_v21  ;;  %v246_v49 = vld [vmem:[#allocation9 + $0x40] sm:$0xff]  ;;  %v4172_v52 = vpack.c.bf16 %v266_v48, %v263_v46  ;;  %v265_v54 = vld [vmem:[#allocation9 + $0xd8] sm:$0xff]  ;;  %v272_v57 = vld [vmem:[#allocation9 + $0x110] sm:$0xff] }
  0x57   :  { %3259 = vmatpush1.bf16.msra.mxu0 %v4138_v22  ;;  %350 = vmatprep.mubr.f32.mxu0 %v4036_v0  ;;  %v262_v53 = vld [vmem:[#allocation9 + $0xc0] sm:$0xff]  ;;  %v269_v55 = vld [vmem:[#allocation9 + $0xf8] sm:$0xff]  ;;  %v4175_v56 = vpack.c.bf16 %v249_v50, %v246_v49  ;;  %v252_v58 = vld [vmem:[#allocation9 + $0x70] sm:$0xff] }
  0x58   :  { %3261 = vmatprep.subr.bf16.mxu0 %v4141_v23  ;;  %3255 = vmatpush3.bf16.msra.mxu1 %v4154_v38  ;;  %v255_v59 = vld [vmem:[#allocation9 + $0x88] sm:$0xff]  ;;  %v4181_v60 = vpack.c.bf16 %v265_v54, %v262_v53  ;;  %v4184_v61 = vpack.c.bf16 %v272_v57, %v269_v55  ;;  %v268_v62 = vld [vmem:[#allocation9 + $0xf0] sm:$0xff]  ;;  %v278_v4 = vld [vmem:[#allocation9 + $0x140] sm:$0xff] }
  0x59   :  { %3288 = vmatprep.subr.bf16.mxu1 %v4037_v1  ;;  %v271_v63 = vld [vmem:[#allocation9 + $0x108] sm:$0xff]  ;;  %v4187_v3 = vpack.c.bf16 %v255_v59, %v252_v58  ;;  %v258_v6 = vld [vmem:[#allocation9 + $0xa0] sm:$0xff]  ;;  %v261_v7 = vld [vmem:[#allocation9 + $0xb8] sm:$0xff] }
  0x5a   :  { %v275_v2 = vld [vmem:[#allocation9 + $0x128] sm:$0xff]  ;;  %v4191_v8 = vpack.c.bf16 %v271_v63, %v268_v62  ;;  %v274_v12 = vld [vmem:[#allocation9 + $0x120] sm:$0xff]  ;;  %v277_v13 = vld [vmem:[#allocation9 + $0x138] sm:$0xff]  ;;  %v4197_v17 = vpack.c.bf16 %v261_v7, %v258_v6 }
  0x5b   :  { %3263 = vmatpush1.bf16.msra.mxu0 %v4147_v32  ;;  %2883 = vmatmul.mubr.msk.f32.vlgmr.msra.gmra.mrb[0].mxu1 %vm93_vm1, %v80_v21  ;;  %v4194_v11 = vpack.c.bf16 %v278_v4, %v275_v2  ;;  %v281_v14 = vld [vmem:[#allocation9 + $0x158] sm:$0xff]  ;;  %v284_v18 = vld [vmem:[#allocation9 + $0x170] sm:$0xff]  ;;  %v267_v20 = vld [vmem:[#allocation9 + $0xe8] sm:$0xff]  ;;  %v4201_v21 = vpack.c.bf16 %v277_v13, %v274_v12 }
  0x5c   :  { %3265 = vmatprep.subr.bf16.mxu0 %v4151_v34  ;;  %3290 = vmatpush3.bf16.msra.mxu1 %v4164_v47  ;;  %v264_v19 = vld [vmem:[#allocation9 + $0xd0] sm:$0xff]  ;;  %v4204_v24 = vpack.c.bf16 %v284_v18, %v281_v14  ;;  %v283_v26 = vld [vmem:[#allocation9 + $0x168] sm:$0xff]  ;;  %v270_v28 = vld [vmem:[#allocation9 + $0x100] sm:$0xff] }
  0x5d   :  { %3291 = vmatprep.subr.bf16.mxu1 %v4037_v1  ;;  %2917 = vmatprep.mubr.msk.f32.mxu1 %vm4038_vm0, %v4036_v0  ;;  %v280_v25 = vld [vmem:[#allocation9 + $0x150] sm:$0xff]  ;;  %v4207_v27 = vpack.c.bf16 %v267_v20, %v264_v19  ;;  %v273_v29 = vld [vmem:[#allocation9 + $0x118] sm:$0xff]  ;;  %v279_v36 = vld [vmem:[#allocation9 + $0x148] sm:$0xff] }
  0x5e   :  { %v4211_v31 = vpack.c.bf16 %v283_v26, %v280_v25  ;;  %v4215_v33 = vpack.c.bf16 %v273_v29, %v270_v28  ;;  %v276_v35 = vld [vmem:[#allocation9 + $0x130] sm:$0xff]  ;;  %v4219_v37 = vld [vmem:[#allocation6] sm:$0xff]  ;;  %v282_v40 = vld [vmem:[#allocation9 + $0x160] sm:$0xff] }
  0x5f   :  { %3267 = vmatpush1.bf16.msra.mxu0 %v4158_v42  ;;  %v4222_v39 = vpack.c.bf16 %v279_v36, %v276_v35  ;;  %v285_v41 = vld [vmem:[#allocation9 + $0x178] sm:$0xff]  ;;  %v454_v45 = vld [vmem:[#allocation3 + $0x8] sm:$0xff]  ;;  %v767_v26 = vld [vmem:[#allocation3 + $0x10] sm:$0xff] }
  0x60   :  { %3269 = vmatprep.subr.bf16.mxu0 %v4161_v43  ;;  %3293 = vmatpush3.bf16.msra.mxu1 %v4175_v56  ;;  %v4230_v44 = vpack.c.bf16 %v285_v41, %v282_v40 }
  0x61   :  { %3294 = vmatprep.subr.bf16.mxu1 %v4037_v1 }
  0x63   :  { %3271 = vmatpush1.bf16.msra.mxu0 %v4168_v51 }
  0x64   :  { %3273 = vmatprep.subr.bf16.mxu0 %v4172_v52  ;;  %3296 = vmatpush3.bf16.msra.mxu1 %v4187_v3 }
  0x65   :  { %3297 = vmatprep.subr.bf16.mxu1 %v4037_v1 }
  0x67   :  { %3275 = vmatpush1.bf16.msra.mxu0 %v4181_v60 }
  0x68   :  { %3277 = vmatprep.subr.bf16.mxu0 %v4184_v61  ;;  %3299 = vmatpush3.bf16.msra.mxu1 %v4197_v17 }
  0x69   :  { %3300 = vmatprep.subr.bf16.mxu1 %v4037_v1 }
  0x6b   :  { %3279 = vmatpush1.bf16.msra.mxu0 %v4191_v8 }
  0x6c   :  { %3281 = vmatprep.subr.bf16.mxu0 %v4194_v11  ;;  %3302 = vmatpush3.bf16.msra.mxu1 %v4207_v27 }
  0x6d   :  { %3303 = vmatprep.subr.bf16.mxu1 %v4037_v1 }
  0x6f   :  { %3283 = vmatpush1.bf16.msra.mxu0 %v4201_v21 }
  0x70   :  { %3285 = vmatprep.subr.bf16.mxu0 %v4204_v24  ;;  %3305 = vmatpush3.bf16.msra.mxu1 %v4215_v33 }
  0x71   :  { %3306 = vmatprep.subr.bf16.mxu1 %v4037_v1 }
  0x73   :  { %3287 = vmatpush1.bf16.msra.mxu0 %v4211_v31 }
  0x74   :  { %3313 = vmatprep.subr.bf16.mxu0 %v4124_v5  ;;  %3308 = vmatpush3.bf16.msra.mxu1 %v4222_v39 }
  0x75   :  { %3309 = vmatprep.subr.bf16.mxu1 %v4037_v1 }
  0x76   :  { %351 = vmatmul.mubr.f32.vlgmr.msra.gmra.mrb[0].mxu0 %v4219_v37 }
  0x77   :  { %3315 = vmatpush1.bf16.msra.mxu0 %v4126_v9  ;;  %522 = vmatprep.mubr.f32.mxu0 %v4036_v0 }
  0x78   :  { %3317 = vmatprep.subr.bf16.mxu0 %v4128_v10  ;;  %3311 = vmatpush3.bf16.msra.mxu1 %v4230_v44 }
  0x79   :  { %3320 = vmatprep.subr.bf16.mxu1 %v4037_v1 }
  0x7b   :  { %3319 = vmatpush1.bf16.msra.mxu0 %v4132_v15  ;;  %2918 = vmatmul.mubr.f32.vlgmr.msra.gmra.mrb[2].mxu1 %v4219_v37 }
  0x7c   :  { %3327 = vmatprep.subr.bf16.mxu0 %v4135_v16  ;;  %3322 = vmatpush3.bf16.msra.mxu1 %v4144_v30 }
  0x7d   :  { %2928 = vmatprep.mubr.msk.f32.mxu1 %vm4038_vm0, %v4036_v0  ;;  %3323 = vmatprep.subr.bf16.mxu1 %v4037_v1 }
  0x7e   :  { %2670 = vmatmul.mubr.msk.f32.vlgmr.msra.gmra.mrb[2].mxu0 %vm93_vm1, %v454_v45 }
  0x7f   :  { %3329 = vmatpush1.bf16.msra.mxu0 %v4138_v22  ;;  %663 = vmatprep.mubr.f32.mxu0 %v4036_v0 }
  0x80   :  { %3325 = vmatpush3.bf16.msra.mxu1 %v4154_v38  ;;  %3331 = vmatprep.subr.bf16.mxu0 %v4141_v23 }
  0x81   :  { %3358 = vmatprep.subr.bf16.mxu1 %v4037_v1 }
  0x83   :  { %2929 = vmatmul.mubr.msk.f32.vlgmr.msra.gmra.mrb[4].mxu1 %vm93_vm1, %v454_v45  ;;  %3333 = vmatpush1.bf16.msra.mxu0 %v4147_v32 }
  0x84   :  { %3360 = vmatpush3.bf16.msra.mxu1 %v4164_v47  ;;  %2963 = vmatprep.mubr.msk.f32.mxu1 %vm4038_vm0, %v4036_v0 }
  0x85   :  { %3361 = vmatprep.subr.bf16.mxu1 %v4037_v1  ;;  %3335 = vmatprep.subr.bf16.mxu0 %v4151_v34 }
  0x87   :  { %3337 = vmatpush1.bf16.msra.mxu0 %v4158_v42 }
  0x88   :  { %3363 = vmatpush3.bf16.msra.mxu1 %v4175_v56  ;;  %3339 = vmatprep.subr.bf16.mxu0 %v4161_v43 }
  0x89   :  { %3364 = vmatprep.subr.bf16.mxu1 %v4037_v1 }
  0x8b   :  { %3341 = vmatpush1.bf16.msra.mxu0 %v4168_v51 }
  0x8c   :  { %3366 = vmatpush3.bf16.msra.mxu1 %v4187_v3  ;;  %3343 = vmatprep.subr.bf16.mxu0 %v4172_v52 }
  0x8d   :  { %3367 = vmatprep.subr.bf16.mxu1 %v4037_v1 }
  0x8f   :  { %3345 = vmatpush1.bf16.msra.mxu0 %v4181_v60 }
  0x90   :  { %3369 = vmatpush3.bf16.msra.mxu1 %v4197_v17  ;;  %3347 = vmatprep.subr.bf16.mxu0 %v4184_v61 }
  0x91   :  { %3370 = vmatprep.subr.bf16.mxu1 %v4037_v1 }
  0x93   :  { %3349 = vmatpush1.bf16.msra.mxu0 %v4191_v8 }
  0x94   :  { %3372 = vmatpush3.bf16.msra.mxu1 %v4207_v27  ;;  %3351 = vmatprep.subr.bf16.mxu0 %v4194_v11 }
  0x95   :  { %3373 = vmatprep.subr.bf16.mxu1 %v4037_v1 }
  0x97   :  { %3353 = vmatpush1.bf16.msra.mxu0 %v4201_v21 }
  0x98   :  { %3375 = vmatpush3.bf16.msra.mxu1 %v4215_v33  ;;  %3355 = vmatprep.subr.bf16.mxu0 %v4204_v24 }
  0x99   :  { %3376 = vmatprep.subr.bf16.mxu1 %v4037_v1 }
  0x9b   :  { %3357 = vmatpush1.bf16.msra.mxu0 %v4211_v31 }
  0x9c   :  { %3378 = vmatpush3.bf16.msra.mxu1 %v4222_v39  ;;  %3383 = vmatprep.subr.bf16.mxu0 %v4124_v5 }
  0x9d   :  { %3379 = vmatprep.subr.bf16.mxu1 %v4037_v1 }
  0xa0   :  { %3381 = vmatpush3.bf16.msra.mxu1 %v4230_v44 }
  0xa1   :  { %3390 = vmatprep.subr.bf16.mxu1 %v4037_v1 }
 0x12e   :  { %v234_v46 = vpop.f32.mrb[0].mxu1 }
 0x12f   :  { %v2884_v48 = vpop.f32.mrb[1].mxu1 }
 0x149   :  { %v352_v49 = vpop.f32.mrb[0].mxu0 }
 0x14a   :  { %v2668_v50 = vmul.f32 -1.442695, %v352_v49  ;;  %v354_v53 = vpop.f32.mrb[1].mxu0 }
 0x14b   :  { %v2669_v54 = vmul.f32 -1.442695, %v354_v53 }
 0x14c   :  { %3830 = vpow2.f32 %v2668_v50 }
 0x14d   :  { %3832 = vpow2.f32 %v2669_v54 }
 0x14e   :  { %v423_v55 = vpop.f32.mrb[2].mxu1 }
 0x14f   :  { %v2919_v57 = vpop.f32.mrb[3].mxu1 }
 0x156   :  { %v3831_v58 = vpop.eup %3830  ;;  %v595_v20 = vpop.f32.mrb[4].mxu1 }
 0x157   :  { %v431_v59 = vadd.f32 1.0, %v3831_v58  ;;  %v3833_v62 = vpop.eup %3832  ;;  %v2930_v25 = vpop.f32.mrb[5].mxu1 }
 0x158   :  { %v438_v63 = vadd.f32 1.0, %v3833_v62 }
 0x159   :  { %3834 = vrcp.f32 %v431_v59 }
 0x15a   :  { %3836 = vrcp.f32 %v438_v63 }
 0x163   :  { %v3835_v2 = vpop.eup %3834 }
 0x164   :  { %v441_v4 = vmul.f32 %v3835_v2, %v423_v55  ;;  %v3837_v7 = vpop.eup %3836 }
 0x165   :  { %v444_v12 = vsub.f32 1.0, %v3837_v7  ;;  %v446_v18 = vmul.f32 %v3837_v7, %v4219_v37 }
 0x166   :  { %v442_v6 = vadd.f32 %v441_v4, %v234_v46  ;;  %v1080_v4 = vld [vmem:[#allocation3 + $0x18] sm:$0xff] }
 0x168   :  { %3838 = vtanh.f32 %v442_v6 }
 0x172   :  { %v3839_v13 = vpop.eup %3838 }
 0x173   :  { %v445_v14 = vmul.f32 %v3839_v13, %v444_v12 }
 0x175   :  { %v4283_v19 = vadd.f32 %v446_v18, %v445_v14 }
 0x177   :  { %664 = vmatmul.mubr.f32.vlgmr.msra.gmra.mrb[2].mxu0 %v4283_v19  ;;  %2964 = vmatmul.mubr.f32.vlgmr.msra.gmra.mrb[6].mxu1 %v4283_v19 }
 0x178   :  { %3385 = vmatpush1.bf16.msra.mxu0 %v4126_v9  ;;  %3392 = vmatpush3.bf16.msra.mxu1 %v4144_v30 }
 0x179   :  { %3387 = vmatprep.subr.bf16.mxu0 %v4128_v10  ;;  %3393 = vmatprep.subr.bf16.mxu1 %v4037_v1 }
 0x17a   :  { %835 = vmatprep.mubr.f32.mxu0 %v4036_v0  ;;  %2974 = vmatprep.mubr.msk.f32.mxu1 %vm4038_vm0, %v4036_v0 }
 0x17c   :  { %3389 = vmatpush1.bf16.msra.mxu0 %v4132_v15  ;;  %3395 = vmatpush3.bf16.msra.mxu1 %v4154_v38 }
 0x17d   :  { %3397 = vmatprep.subr.bf16.mxu0 %v4135_v16  ;;  %3428 = vmatprep.subr.bf16.mxu1 %v4037_v1 }
 0x17f   :  { %2674 = vmatmul.mubr.msk.f32.vlgmr.msra.gmra.mrb[4].mxu0 %vm93_vm1, %v767_v26  ;;  %2975 = vmatmul.mubr.msk.f32.vlgmr.msra.gmra.mrb[8].mxu1 %vm93_vm1, %v767_v26 }
 0x180   :  { %3399 = vmatpush1.bf16.msra.mxu0 %v4138_v22  ;;  %3430 = vmatpush3.bf16.msra.mxu1 %v4164_v47 }
 0x181   :  { %3401 = vmatprep.subr.bf16.mxu0 %v4141_v23  ;;  %3431 = vmatprep.subr.bf16.mxu1 %v4037_v1 }
 0x182   :  { %976 = vmatprep.mubr.f32.mxu0 %v4036_v0  ;;  %3009 = vmatprep.mubr.msk.f32.mxu1 %vm4038_vm0, %v4036_v0 }
 0x184   :  { %3403 = vmatpush1.bf16.msra.mxu0 %v4147_v32  ;;  %3433 = vmatpush3.bf16.msra.mxu1 %v4175_v56 }
 0x185   :  { %3405 = vmatprep.subr.bf16.mxu0 %v4151_v34  ;;  %3434 = vmatprep.subr.bf16.mxu1 %v4037_v1 }
 0x188   :  { %3407 = vmatpush1.bf16.msra.mxu0 %v4158_v42  ;;  %3436 = vmatpush3.bf16.msra.mxu1 %v4187_v3 }
 0x189   :  { %3409 = vmatprep.subr.bf16.mxu0 %v4161_v43  ;;  %3437 = vmatprep.subr.bf16.mxu1 %v4037_v1 }
 0x18c   :  { %3411 = vmatpush1.bf16.msra.mxu0 %v4168_v51  ;;  %3439 = vmatpush3.bf16.msra.mxu1 %v4197_v17 }
 0x18d   :  { %3413 = vmatprep.subr.bf16.mxu0 %v4172_v52  ;;  %3440 = vmatprep.subr.bf16.mxu1 %v4037_v1 }
 0x190   :  { %3415 = vmatpush1.bf16.msra.mxu0 %v4181_v60  ;;  %3442 = vmatpush3.bf16.msra.mxu1 %v4207_v27 }
 0x191   :  { %3417 = vmatprep.subr.bf16.mxu0 %v4184_v61  ;;  %3443 = vmatprep.subr.bf16.mxu1 %v4037_v1 }
 0x194   :  { %3419 = vmatpush1.bf16.msra.mxu0 %v4191_v8  ;;  %3445 = vmatpush3.bf16.msra.mxu1 %v4215_v33 }
 0x195   :  { %3421 = vmatprep.subr.bf16.mxu0 %v4194_v11  ;;  %3446 = vmatprep.subr.bf16.mxu1 %v4037_v1 }
 0x198   :  { %3423 = vmatpush1.bf16.msra.mxu0 %v4201_v21  ;;  %3448 = vmatpush3.bf16.msra.mxu1 %v4222_v39 }
 0x199   :  { %3425 = vmatprep.subr.bf16.mxu0 %v4204_v24  ;;  %3449 = vmatprep.subr.bf16.mxu1 %v4037_v1 }
 0x19c   :  { %3427 = vmatpush1.bf16.msra.mxu0 %v4211_v31  ;;  %3451 = vmatpush3.bf16.msra.mxu1 %v4230_v44 }
 0x19d   :  { %3453 = vmatprep.subr.bf16.mxu0 %v4124_v5  ;;  %3460 = vmatprep.subr.bf16.mxu1 %v4037_v1 }
 0x24a   :  { %v665_v28 = vpop.f32.mrb[2].mxu0  ;;  %v736_v29 = vpop.f32.mrb[6].mxu1 }
 0x24b   :  { %v2672_v35 = vmul.f32 -1.442695, %v665_v28  ;;  %v667_v36 = vpop.f32.mrb[3].mxu0  ;;  %v2965_v37 = vpop.f32.mrb[7].mxu1 }
 0x24c   :  { %v2673_v40 = vmul.f32 -1.442695, %v667_v36 }
 0x24d   :  { %3840 = vpow2.f32 %v2672_v35 }
 0x24e   :  { %3842 = vpow2.f32 %v2673_v40 }
 0x252   :  { %v908_v63 = vpop.f32.mrb[8].mxu1 }
 0x253   :  { %v2976_v2 = vpop.f32.mrb[9].mxu1 }
 0x257   :  { %v3841_v41 = vpop.eup %3840 }
 0x258   :  { %v744_v45 = vadd.f32 1.0, %v3841_v41  ;;  %v3843_v46 = vpop.eup %3842 }
 0x259   :  { %v751_v48 = vadd.f32 1.0, %v3843_v46 }
 0x25a   :  { %3844 = vrcp.f32 %v744_v45 }
 0x25b   :  { %3846 = vrcp.f32 %v751_v48 }
 0x264   :  { %v3845_v49 = vpop.eup %3844 }
 0x265   :  { %v754_v50 = vmul.f32 %v3845_v49, %v736_v29  ;;  %v3847_v54 = vpop.eup %3846 }
 0x266   :  { %v757_v55 = vsub.f32 1.0, %v3847_v54  ;;  %v759_v59 = vmul.f32 %v3847_v54, %v4283_v19 }
 0x267   :  { %v755_v53 = vadd.f32 %v754_v50, %v595_v20  ;;  %v1393_v50 = vld [vmem:[#allocation3 + $0x20] sm:$0xff] }
 0x269   :  { %3848 = vtanh.f32 %v755_v53 }
 0x273   :  { %v3849_v57 = vpop.eup %3848 }
 0x274   :  { %v758_v58 = vmul.f32 %v3849_v57, %v757_v55 }
 0x276   :  { %v4336_v62 = vadd.f32 %v759_v59, %v758_v58 }
 0x278   :  { %977 = vmatmul.mubr.f32.vlgmr.msra.gmra.mrb[4].mxu0 %v4336_v62  ;;  %3010 = vmatmul.mubr.f32.vlgmr.msra.gmra.mrb[10].mxu1 %v4336_v62 }
 0x279   :  { %3455 = vmatpush1.bf16.msra.mxu0 %v4126_v9  ;;  %3462 = vmatpush3.bf16.msra.mxu1 %v4144_v30 }
 0x27a   :  { %3457 = vmatprep.subr.bf16.mxu0 %v4128_v10  ;;  %3463 = vmatprep.subr.bf16.mxu1 %v4037_v1 }
 0x27b   :  { %1148 = vmatprep.mubr.f32.mxu0 %v4036_v0  ;;  %3020 = vmatprep.mubr.msk.f32.mxu1 %vm4038_vm0, %v4036_v0 }
 0x27d   :  { %3459 = vmatpush1.bf16.msra.mxu0 %v4132_v15  ;;  %3465 = vmatpush3.bf16.msra.mxu1 %v4154_v38 }
 0x27e   :  { %3467 = vmatprep.subr.bf16.mxu0 %v4135_v16  ;;  %3498 = vmatprep.subr.bf16.mxu1 %v4037_v1 }
 0x280   :  { %2678 = vmatmul.mubr.msk.f32.vlgmr.msra.gmra.mrb[6].mxu0 %vm93_vm1, %v1080_v4  ;;  %3021 = vmatmul.mubr.msk.f32.vlgmr.msra.gmra.mrb[12].mxu1 %vm93_vm1, %v1080_v4 }
 0x281   :  { %3469 = vmatpush1.bf16.msra.mxu0 %v4138_v22  ;;  %3500 = vmatpush3.bf16.msra.mxu1 %v4164_v47 }
 0x282   :  { %3471 = vmatprep.subr.bf16.mxu0 %v4141_v23  ;;  %3501 = vmatprep.subr.bf16.mxu1 %v4037_v1 }
 0x283   :  { %1289 = vmatprep.mubr.f32.mxu0 %v4036_v0  ;;  %3055 = vmatprep.mubr.msk.f32.mxu1 %vm4038_vm0, %v4036_v0 }
 0x285   :  { %3473 = vmatpush1.bf16.msra.mxu0 %v4147_v32  ;;  %3503 = vmatpush3.bf16.msra.mxu1 %v4175_v56 }
 0x286   :  { %3475 = vmatprep.subr.bf16.mxu0 %v4151_v34  ;;  %3504 = vmatprep.subr.bf16.mxu1 %v4037_v1 }
 0x289   :  { %3477 = vmatpush1.bf16.msra.mxu0 %v4158_v42  ;;  %3506 = vmatpush3.bf16.msra.mxu1 %v4187_v3 }
 0x28a   :  { %3479 = vmatprep.subr.bf16.mxu0 %v4161_v43  ;;  %3507 = vmatprep.subr.bf16.mxu1 %v4037_v1 }
 0x28d   :  { %3481 = vmatpush1.bf16.msra.mxu0 %v4168_v51  ;;  %3509 = vmatpush3.bf16.msra.mxu1 %v4197_v17 }
 0x28e   :  { %3483 = vmatprep.subr.bf16.mxu0 %v4172_v52  ;;  %3510 = vmatprep.subr.bf16.mxu1 %v4037_v1 }
 0x291   :  { %3485 = vmatpush1.bf16.msra.mxu0 %v4181_v60  ;;  %3512 = vmatpush3.bf16.msra.mxu1 %v4207_v27 }
 0x292   :  { %3487 = vmatprep.subr.bf16.mxu0 %v4184_v61  ;;  %3513 = vmatprep.subr.bf16.mxu1 %v4037_v1 }
 0x295   :  { %3489 = vmatpush1.bf16.msra.mxu0 %v4191_v8  ;;  %3515 = vmatpush3.bf16.msra.mxu1 %v4215_v33 }
 0x296   :  { %3491 = vmatprep.subr.bf16.mxu0 %v4194_v11  ;;  %3516 = vmatprep.subr.bf16.mxu1 %v4037_v1 }
 0x299   :  { %3493 = vmatpush1.bf16.msra.mxu0 %v4201_v21  ;;  %3518 = vmatpush3.bf16.msra.mxu1 %v4222_v39 }
 0x29a   :  { %3495 = vmatprep.subr.bf16.mxu0 %v4204_v24  ;;  %3519 = vmatprep.subr.bf16.mxu1 %v4037_v1 }
 0x29d   :  { %3497 = vmatpush1.bf16.msra.mxu0 %v4211_v31  ;;  %3521 = vmatpush3.bf16.msra.mxu1 %v4230_v44 }
 0x29e   :  { %3523 = vmatprep.subr.bf16.mxu0 %v4124_v5  ;;  %3530 = vmatprep.subr.bf16.mxu1 %v4037_v1 }
 0x34b   :  { %v978_v6 = vpop.f32.mrb[4].mxu0  ;;  %v1049_v7 = vpop.f32.mrb[10].mxu1 }
 0x34c   :  { %v2676_v12 = vmul.f32 -1.442695, %v978_v6  ;;  %v980_v13 = vpop.f32.mrb[5].mxu0  ;;  %v3011_v14 = vpop.f32.mrb[11].mxu1 }
 0x34d   :  { %v2677_v18 = vmul.f32 -1.442695, %v980_v13 }
 0x34e   :  { %3850 = vpow2.f32 %v2676_v12 }
 0x34f   :  { %3852 = vpow2.f32 %v2677_v18 }
 0x353   :  { %v1221_v48 = vpop.f32.mrb[12].mxu1 }
 0x354   :  { %v3022_v49 = vpop.f32.mrb[13].mxu1 }
 0x358   :  { %v3851_v19 = vpop.eup %3850 }
 0x359   :  { %v1057_v20 = vadd.f32 1.0, %v3851_v19  ;;  %v3853_v25 = vpop.eup %3852 }
 0x35a   :  { %v1064_v26 = vadd.f32 1.0, %v3853_v25 }
 0x35b   :  { %3854 = vrcp.f32 %v1057_v20 }
 0x35c   :  { %3856 = vrcp.f32 %v1064_v26 }
 0x365   :  { %v3855_v28 = vpop.eup %3854 }
 0x366   :  { %v1067_v29 = vmul.f32 %v3855_v28, %v1049_v7  ;;  %v3857_v36 = vpop.eup %3856 }
 0x367   :  { %v1070_v37 = vsub.f32 1.0, %v3857_v36  ;;  %v1072_v45 = vmul.f32 %v3857_v36, %v4336_v62 }
 0x368   :  { %v1068_v35 = vadd.f32 %v1067_v29, %v908_v63  ;;  %v1706_v29 = vld [vmem:[#allocation3 + $0x28] sm:$0xff] }
 0x36a   :  { %3858 = vtanh.f32 %v1068_v35 }
 0x374   :  { %v3859_v40 = vpop.eup %3858 }
 0x375   :  { %v1071_v41 = vmul.f32 %v3859_v40, %v1070_v37 }
 0x377   :  { %v4389_v46 = vadd.f32 %v1072_v45, %v1071_v41 }
 0x379   :  { %1290 = vmatmul.mubr.f32.vlgmr.msra.gmra.mrb[6].mxu0 %v4389_v46  ;;  %3056 = vmatmul.mubr.f32.vlgmr.msra.gmra.mrb[14].mxu1 %v4389_v46 }
 0x37a   :  { %3525 = vmatpush1.bf16.msra.mxu0 %v4126_v9  ;;  %3532 = vmatpush3.bf16.msra.mxu1 %v4144_v30 }
 0x37b   :  { %3527 = vmatprep.subr.bf16.mxu0 %v4128_v10  ;;  %3533 = vmatprep.subr.bf16.mxu1 %v4037_v1 }
 0x37c   :  { %1461 = vmatprep.mubr.f32.mxu0 %v4036_v0  ;;  %3066 = vmatprep.mubr.msk.f32.mxu1 %vm4038_vm0, %v4036_v0 }
 0x37e   :  { %3529 = vmatpush1.bf16.msra.mxu0 %v4132_v15  ;;  %3535 = vmatpush3.bf16.msra.mxu1 %v4154_v38 }
 0x37f   :  { %3537 = vmatprep.subr.bf16.mxu0 %v4135_v16  ;;  %3568 = vmatprep.subr.bf16.mxu1 %v4037_v1 }
 0x381   :  { %2682 = vmatmul.mubr.msk.f32.vlgmr.msra.gmra.mrb[8].mxu0 %vm93_vm1, %v1393_v50  ;;  %3067 = vmatmul.mubr.msk.f32.vlgmr.msra.gmra.mrb[16].mxu1 %vm93_vm1, %v1393_v50 }
 0x382   :  { %3539 = vmatpush1.bf16.msra.mxu0 %v4138_v22  ;;  %3570 = vmatpush3.bf16.msra.mxu1 %v4164_v47 }
 0x383   :  { %3541 = vmatprep.subr.bf16.mxu0 %v4141_v23  ;;  %3571 = vmatprep.subr.bf16.mxu1 %v4037_v1 }
 0x384   :  { %1602 = vmatprep.mubr.f32.mxu0 %v4036_v0  ;;  %3101 = vmatprep.mubr.msk.f32.mxu1 %vm4038_vm0, %v4036_v0 }
 0x386   :  { %3543 = vmatpush1.bf16.msra.mxu0 %v4147_v32  ;;  %3573 = vmatpush3.bf16.msra.mxu1 %v4175_v56 }
 0x387   :  { %3545 = vmatprep.subr.bf16.mxu0 %v4151_v34  ;;  %3574 = vmatprep.subr.bf16.mxu1 %v4037_v1 }
 0x38a   :  { %3547 = vmatpush1.bf16.msra.mxu0 %v4158_v42  ;;  %3576 = vmatpush3.bf16.msra.mxu1 %v4187_v3 }
 0x38b   :  { %3549 = vmatprep.subr.bf16.mxu0 %v4161_v43  ;;  %3577 = vmatprep.subr.bf16.mxu1 %v4037_v1 }
 0x38e   :  { %3551 = vmatpush1.bf16.msra.mxu0 %v4168_v51  ;;  %3579 = vmatpush3.bf16.msra.mxu1 %v4197_v17 }
 0x38f   :  { %3553 = vmatprep.subr.bf16.mxu0 %v4172_v52  ;;  %3580 = vmatprep.subr.bf16.mxu1 %v4037_v1 }
 0x392   :  { %3555 = vmatpush1.bf16.msra.mxu0 %v4181_v60  ;;  %3582 = vmatpush3.bf16.msra.mxu1 %v4207_v27 }
 0x393   :  { %3557 = vmatprep.subr.bf16.mxu0 %v4184_v61  ;;  %3583 = vmatprep.subr.bf16.mxu1 %v4037_v1 }
 0x396   :  { %3559 = vmatpush1.bf16.msra.mxu0 %v4191_v8  ;;  %3585 = vmatpush3.bf16.msra.mxu1 %v4215_v33 }
 0x397   :  { %3561 = vmatprep.subr.bf16.mxu0 %v4194_v11  ;;  %3586 = vmatprep.subr.bf16.mxu1 %v4037_v1 }
 0x39a   :  { %3563 = vmatpush1.bf16.msra.mxu0 %v4201_v21  ;;  %3588 = vmatpush3.bf16.msra.mxu1 %v4222_v39 }
 0x39b   :  { %3565 = vmatprep.subr.bf16.mxu0 %v4204_v24  ;;  %3589 = vmatprep.subr.bf16.mxu1 %v4037_v1 }
 0x39e   :  { %3567 = vmatpush1.bf16.msra.mxu0 %v4211_v31  ;;  %3591 = vmatpush3.bf16.msra.mxu1 %v4230_v44 }
 0x39f   :  { %3593 = vmatprep.subr.bf16.mxu0 %v4124_v5  ;;  %3600 = vmatprep.subr.bf16.mxu1 %v4037_v1 }
 0x44c   :  { %v1291_v53 = vpop.f32.mrb[6].mxu0  ;;  %v1362_v54 = vpop.f32.mrb[14].mxu1 }
 0x44d   :  { %v2680_v55 = vmul.f32 -1.442695, %v1291_v53  ;;  %v1293_v57 = vpop.f32.mrb[7].mxu0  ;;  %v3057_v58 = vpop.f32.mrb[15].mxu1 }
 0x44e   :  { %v2681_v59 = vmul.f32 -1.442695, %v1293_v57 }
 0x44f   :  { %3860 = vpow2.f32 %v2680_v55 }
 0x450   :  { %3862 = vpow2.f32 %v2681_v59 }
 0x454   :  { %v1534_v26 = vpop.f32.mrb[16].mxu1 }
 0x455   :  { %v3068_v28 = vpop.f32.mrb[17].mxu1 }
 0x459   :  { %v3861_v62 = vpop.eup %3860 }
 0x45a   :  { %v1370_v63 = vadd.f32 1.0, %v3861_v62  ;;  %v3863_v2 = vpop.eup %3862 }
 0x45b   :  { %v1377_v4 = vadd.f32 1.0, %v3863_v2 }
 0x45c   :  { %3864 = vrcp.f32 %v1370_v63 }
 0x45d   :  { %3866 = vrcp.f32 %v1377_v4 }
 0x466   :  { %v3865_v6 = vpop.eup %3864 }
 0x467   :  { %v1380_v7 = vmul.f32 %v3865_v6, %v1362_v54  ;;  %v3867_v13 = vpop.eup %3866 }
 0x468   :  { %v1383_v14 = vsub.f32 1.0, %v3867_v13  ;;  %v1385_v20 = vmul.f32 %v3867_v13, %v4389_v46 }
 0x469   :  { %v1381_v12 = vadd.f32 %v1380_v7, %v1221_v48  ;;  %v2019_v7 = vld [vmem:[#allocation3 + $0x30] sm:$0xff] }
 0x46b   :  { %3868 = vtanh.f32 %v1381_v12 }
 0x475   :  { %v3869_v18 = vpop.eup %3868 }
 0x476   :  { %v1384_v19 = vmul.f32 %v3869_v18, %v1383_v14 }
 0x478   :  { %v4442_v25 = vadd.f32 %v1385_v20, %v1384_v19 }
 0x47a   :  { %1603 = vmatmul.mubr.f32.vlgmr.msra.gmra.mrb[8].mxu0 %v4442_v25  ;;  %3102 = vmatmul.mubr.f32.vlgmr.msra.gmra.mrb[18].mxu1 %v4442_v25 }
 0x47b   :  { %3595 = vmatpush1.bf16.msra.mxu0 %v4126_v9  ;;  %3602 = vmatpush3.bf16.msra.mxu1 %v4144_v30 }
 0x47c   :  { %3597 = vmatprep.subr.bf16.mxu0 %v4128_v10  ;;  %3603 = vmatprep.subr.bf16.mxu1 %v4037_v1 }
 0x47d   :  { %1774 = vmatprep.mubr.f32.mxu0 %v4036_v0  ;;  %3112 = vmatprep.mubr.msk.f32.mxu1 %vm4038_vm0, %v4036_v0 }
 0x47f   :  { %3599 = vmatpush1.bf16.msra.mxu0 %v4132_v15  ;;  %3605 = vmatpush3.bf16.msra.mxu1 %v4154_v38 }
 0x480   :  { %3607 = vmatprep.subr.bf16.mxu0 %v4135_v16  ;;  %3638 = vmatprep.subr.bf16.mxu1 %v4037_v1 }
 0x482   :  { %2686 = vmatmul.mubr.msk.f32.vlgmr.msra.gmra.mrb[10].mxu0 %vm93_vm1, %v1706_v29  ;;  %3113 = vmatmul.mubr.msk.f32.vlgmr.msra.gmra.mrb[20].mxu1 %vm93_vm1, %v1706_v29 }
 0x483   :  { %3609 = vmatpush1.bf16.msra.mxu0 %v4138_v22  ;;  %3640 = vmatpush3.bf16.msra.mxu1 %v4164_v47 }
 0x484   :  { %3611 = vmatprep.subr.bf16.mxu0 %v4141_v23  ;;  %3641 = vmatprep.subr.bf16.mxu1 %v4037_v1 }
 0x485   :  { %1915 = vmatprep.mubr.f32.mxu0 %v4036_v0  ;;  %3147 = vmatprep.mubr.msk.f32.mxu1 %vm4038_vm0, %v4036_v0 }
 0x487   :  { %3613 = vmatpush1.bf16.msra.mxu0 %v4147_v32  ;;  %3643 = vmatpush3.bf16.msra.mxu1 %v4175_v56 }
 0x488   :  { %3615 = vmatprep.subr.bf16.mxu0 %v4151_v34  ;;  %3644 = vmatprep.subr.bf16.mxu1 %v4037_v1 }
 0x48b   :  { %3617 = vmatpush1.bf16.msra.mxu0 %v4158_v42  ;;  %3646 = vmatpush3.bf16.msra.mxu1 %v4187_v3 }
 0x48c   :  { %3619 = vmatprep.subr.bf16.mxu0 %v4161_v43  ;;  %3647 = vmatprep.subr.bf16.mxu1 %v4037_v1 }
 0x48f   :  { %3621 = vmatpush1.bf16.msra.mxu0 %v4168_v51  ;;  %3649 = vmatpush3.bf16.msra.mxu1 %v4197_v17 }
 0x490   :  { %3623 = vmatprep.subr.bf16.mxu0 %v4172_v52  ;;  %3650 = vmatprep.subr.bf16.mxu1 %v4037_v1 }
 0x493   :  { %3625 = vmatpush1.bf16.msra.mxu0 %v4181_v60  ;;  %3652 = vmatpush3.bf16.msra.mxu1 %v4207_v27 }
 0x494   :  { %3627 = vmatprep.subr.bf16.mxu0 %v4184_v61  ;;  %3653 = vmatprep.subr.bf16.mxu1 %v4037_v1 }
 0x497   :  { %3629 = vmatpush1.bf16.msra.mxu0 %v4191_v8  ;;  %3655 = vmatpush3.bf16.msra.mxu1 %v4215_v33 }
 0x498   :  { %3631 = vmatprep.subr.bf16.mxu0 %v4194_v11  ;;  %3656 = vmatprep.subr.bf16.mxu1 %v4037_v1 }
 0x49b   :  { %3633 = vmatpush1.bf16.msra.mxu0 %v4201_v21  ;;  %3658 = vmatpush3.bf16.msra.mxu1 %v4222_v39 }
 0x49c   :  { %3635 = vmatprep.subr.bf16.mxu0 %v4204_v24  ;;  %3659 = vmatprep.subr.bf16.mxu1 %v4037_v1 }
 0x49f   :  { %3637 = vmatpush1.bf16.msra.mxu0 %v4211_v31  ;;  %3661 = vmatpush3.bf16.msra.mxu1 %v4230_v44 }
 0x4a0   :  { %3663 = vmatprep.subr.bf16.mxu0 %v4124_v5  ;;  %3670 = vmatprep.subr.bf16.mxu1 %v4037_v1 }
 0x54d   :  { %v1604_v35 = vpop.f32.mrb[8].mxu0  ;;  %v1675_v36 = vpop.f32.mrb[18].mxu1 }
 0x54e   :  { %v2684_v37 = vmul.f32 -1.442695, %v1604_v35  ;;  %v1606_v40 = vpop.f32.mrb[9].mxu0  ;;  %v3103_v41 = vpop.f32.mrb[19].mxu1 }
 0x54f   :  { %v2685_v45 = vmul.f32 -1.442695, %v1606_v40 }
 0x550   :  { %3870 = vpow2.f32 %v2684_v37 }
 0x551   :  { %3872 = vpow2.f32 %v2685_v45 }
 0x555   :  { %v1847_v4 = vpop.f32.mrb[20].mxu1 }
 0x556   :  { %v3114_v6 = vpop.f32.mrb[21].mxu1 }
 0x55a   :  { %v3871_v46 = vpop.eup %3870 }
 0x55b   :  { %v1683_v48 = vadd.f32 1.0, %v3871_v46  ;;  %v3873_v49 = vpop.eup %3872 }
 0x55c   :  { %v1690_v50 = vadd.f32 1.0, %v3873_v49 }
 0x55d   :  { %3874 = vrcp.f32 %v1683_v48 }
 0x55e   :  { %3876 = vrcp.f32 %v1690_v50 }
 0x567   :  { %v3875_v53 = vpop.eup %3874 }
 0x568   :  { %v1693_v54 = vmul.f32 %v3875_v53, %v1675_v36  ;;  %v3877_v57 = vpop.eup %3876 }
 0x569   :  { %v1696_v58 = vsub.f32 1.0, %v3877_v57  ;;  %v1698_v63 = vmul.f32 %v3877_v57, %v4442_v25 }
 0x56a   :  { %v1694_v55 = vadd.f32 %v1693_v54, %v1534_v26 }
 0x56c   :  { %3878 = vtanh.f32 %v1694_v55 }
 0x576   :  { %v3879_v59 = vpop.eup %3878 }
 0x577   :  { %v1697_v62 = vmul.f32 %v3879_v59, %v1696_v58 }
 0x579   :  { %v4495_v2 = vadd.f32 %v1698_v63, %v1697_v62 }
 0x57b   :  { %1916 = vmatmul.mubr.f32.vlgmr.msra.gmra.mrb[10].mxu0 %v4495_v2  ;;  %3148 = vmatmul.mubr.f32.vlgmr.msra.gmra.mrb[22].mxu1 %v4495_v2 }
 0x57c   :  { %3665 = vmatpush1.bf16.msra.mxu0 %v4126_v9  ;;  %3672 = vmatpush3.bf16.msra.mxu1 %v4144_v30 }
 0x57d   :  { %3667 = vmatprep.subr.bf16.mxu0 %v4128_v10  ;;  %3673 = vmatprep.subr.bf16.mxu1 %v4037_v1 }
 0x57e   :  { %2087 = vmatprep.mubr.f32.mxu0 %v4036_v0  ;;  %3158 = vmatprep.mubr.msk.f32.mxu1 %vm4038_vm0, %v4036_v0 }
 0x580   :  { %3669 = vmatpush1.bf16.msra.mxu0 %v4132_v15  ;;  %3675 = vmatpush3.bf16.msra.mxu1 %v4154_v38 }
 0x581   :  { %3677 = vmatprep.subr.bf16.mxu0 %v4135_v16  ;;  %3708 = vmatprep.subr.bf16.mxu1 %v4037_v1 }
 0x583   :  { %2690 = vmatmul.mubr.msk.f32.vlgmr.msra.gmra.mrb[12].mxu0 %vm93_vm1, %v2019_v7  ;;  %3159 = vmatmul.mubr.msk.f32.vlgmr.msra.gmra.mrb[24].mxu1 %vm93_vm1, %v2019_v7 }
 0x584   :  { %3679 = vmatpush1.bf16.msra.mxu0 %v4138_v22  ;;  %3710 = vmatpush3.bf16.msra.mxu1 %v4164_v47 }
 0x585   :  { %3681 = vmatprep.subr.bf16.mxu0 %v4141_v23  ;;  %3711 = vmatprep.subr.bf16.mxu1 %v4037_v1 }
 0x586   :  { %2228 = vmatprep.mubr.f32.mxu0 %v4036_v0  ;;  %3193 = vmatprep.mubr.msk.f32.mxu1 %vm4038_vm0, %v4036_v0 }
 0x588   :  { %3683 = vmatpush1.bf16.msra.mxu0 %v4147_v32  ;;  %3713 = vmatpush3.bf16.msra.mxu1 %v4175_v56 }
 0x589   :  { %3685 = vmatprep.subr.bf16.mxu0 %v4151_v34  ;;  %3714 = vmatprep.subr.bf16.mxu1 %v4037_v1 }
 0x58c   :  { %3687 = vmatpush1.bf16.msra.mxu0 %v4158_v42  ;;  %3716 = vmatpush3.bf16.msra.mxu1 %v4187_v3 }
 0x58d   :  { %3689 = vmatprep.subr.bf16.mxu0 %v4161_v43  ;;  %3717 = vmatprep.subr.bf16.mxu1 %v4037_v1 }
 0x590   :  { %3691 = vmatpush1.bf16.msra.mxu0 %v4168_v51  ;;  %3719 = vmatpush3.bf16.msra.mxu1 %v4197_v17 }
 0x591   :  { %3693 = vmatprep.subr.bf16.mxu0 %v4172_v52  ;;  %3720 = vmatprep.subr.bf16.mxu1 %v4037_v1 }
 0x594   :  { %3695 = vmatpush1.bf16.msra.mxu0 %v4181_v60  ;;  %3722 = vmatpush3.bf16.msra.mxu1 %v4207_v27 }
 0x595   :  { %3697 = vmatprep.subr.bf16.mxu0 %v4184_v61  ;;  %3723 = vmatprep.subr.bf16.mxu1 %v4037_v1 }
 0x598   :  { %3699 = vmatpush1.bf16.msra.mxu0 %v4191_v8  ;;  %3725 = vmatpush3.bf16.msra.mxu1 %v4215_v33 }
 0x599   :  { %3701 = vmatprep.subr.bf16.mxu0 %v4194_v11  ;;  %3726 = vmatprep.subr.bf16.mxu1 %v4037_v1 }
 0x59c   :  { %3703 = vmatpush1.bf16.msra.mxu0 %v4201_v21  ;;  %3728 = vmatpush3.bf16.msra.mxu1 %v4222_v39 }
 0x59d   :  { %3705 = vmatprep.subr.bf16.mxu0 %v4204_v24  ;;  %3729 = vmatprep.subr.bf16.mxu1 %v4037_v1 }
 0x5a0   :  { %3707 = vmatpush1.bf16.msra.mxu0 %v4211_v31  ;;  %3731 = vmatpush3.bf16.msra.mxu1 %v4230_v44 }
 0x5a1   :  { %3733 = vmatprep.subr.bf16.mxu0 %v4124_v5  ;;  %3740 = vmatprep.subr.bf16.mxu1 %v4037_v1 }
 0x64e   :  { %v1917_v12 = vpop.f32.mrb[10].mxu0  ;;  %v1988_v13 = vpop.f32.mrb[22].mxu1 }
 0x64f   :  { %v2688_v14 = vmul.f32 -1.442695, %v1917_v12  ;;  %v1919_v18 = vpop.f32.mrb[11].mxu0  ;;  %v3149_v19 = vpop.f32.mrb[23].mxu1 }
 0x650   :  { %v2689_v20 = vmul.f32 -1.442695, %v1919_v18 }
 0x651   :  { %3880 = vpow2.f32 %v2688_v14 }
 0x652   :  { %3882 = vpow2.f32 %v2689_v20 }
 0x65b   :  { %v3881_v25 = vpop.eup %3880 }
 0x65c   :  { %v1996_v26 = vadd.f32 1.0, %v3881_v25  ;;  %v3883_v28 = vpop.eup %3882 }
 0x65d   :  { %v2003_v29 = vadd.f32 1.0, %v3883_v28 }
 0x65e   :  { %3884 = vrcp.f32 %v1996_v26 }
 0x65f   :  { %3886 = vrcp.f32 %v2003_v29 }
 0x668   :  { %v3885_v35 = vpop.eup %3884 }
 0x669   :  { %v2006_v36 = vmul.f32 %v3885_v35, %v1988_v13  ;;  %v3887_v5 = vpop.eup %3886 }
 0x66a   :  { %v2009_v40 = vsub.f32 1.0, %v3887_v5  ;;  %v2011_v46 = vmul.f32 %v3887_v5, %v4495_v2 }
 0x66b   :  { %v2007_v37 = vadd.f32 %v2006_v36, %v1847_v4 }
 0x66d   :  { %3888 = vtanh.f32 %v2007_v37 }
 0x677   :  { %v3889_v41 = vpop.eup %3888 }
 0x678   :  { %v2010_v45 = vmul.f32 %v3889_v41, %v2009_v40 }
 0x67a   :  { %v4548_v48 = vadd.f32 %v2011_v46, %v2010_v45 }
 0x67c   :  { %2229 = vmatmul.mubr.f32.vlgmr.msra.gmra.mrb[12].mxu0 %v4548_v48  ;;  %3194 = vmatmul.mubr.f32.vlgmr.msra.gmra.mrb[26].mxu1 %v4548_v48 }
 0x67d   :  { %3735 = vmatpush1.bf16.msra.mxu0 %v4126_v9  ;;  %3742 = vmatpush3.bf16.msra.mxu1 %v4144_v30  ;;  %v2160_v9 = vpop.f32.mrb[24].mxu1  ;;  %v2332_v30 = vld [vmem:[#allocation3 + $0x38] sm:$0xff] }
 0x67e   :  { %3737 = vmatprep.subr.bf16.mxu0 %v4128_v10  ;;  %3743 = vmatprep.subr.bf16.mxu1 %v4037_v1  ;;  %v3160_v49 = vpop.f32.mrb[25].mxu1 }
 0x67f   :  { %2400 = vmatprep.mubr.f32.mxu0 %v4036_v0  ;;  %3204 = vmatprep.mubr.msk.f32.mxu1 %vm4038_vm0, %v4036_v0 }
 0x681   :  { %3739 = vmatpush1.bf16.msra.mxu0 %v4132_v15  ;;  %3745 = vmatpush3.bf16.msra.mxu1 %v4154_v38 }
 0x682   :  { %3747 = vmatprep.subr.bf16.mxu0 %v4135_v16  ;;  %3778 = vmatprep.subr.bf16.mxu1 %v4037_v1 }
 0x684   :  { %2694 = vmatmul.mubr.msk.f32.vlgmr.msra.gmra.mrb[14].mxu0 %vm93_vm1, %v2332_v30  ;;  %3205 = vmatmul.mubr.msk.f32.vlgmr.msra.gmra.mrb[28].mxu1 %vm93_vm1, %v2332_v30 }
 0x685   :  { %3749 = vmatpush1.bf16.msra.mxu0 %v4138_v22  ;;  %3780 = vmatpush3.bf16.msra.mxu1 %v4164_v47 }
 0x686   :  { %3751 = vmatprep.subr.bf16.mxu0 %v4141_v23  ;;  %3781 = vmatprep.subr.bf16.mxu1 %v4037_v1 }
 0x687   :  { %2541 = vmatprep.mubr.f32.mxu0 %v4036_v0  ;;  %3239 = vmatprep.mubr.msk.f32.mxu1 %vm4038_vm0, %v4036_v0 }
 0x689   :  { %3753 = vmatpush1.bf16.msra.mxu0 %v4147_v32  ;;  %3783 = vmatpush3.bf16.msra.mxu1 %v4175_v56 }
 0x68a   :  { %3755 = vmatprep.subr.bf16.mxu0 %v4151_v34  ;;  %3784 = vmatprep.subr.bf16.mxu1 %v4037_v1 }
 0x68d   :  { %3757 = vmatpush1.bf16.msra.mxu0 %v4158_v42  ;;  %3786 = vmatpush3.bf16.msra.mxu1 %v4187_v3 }
 0x68e   :  { %3759 = vmatprep.subr.bf16.mxu0 %v4161_v43  ;;  %3787 = vmatprep.subr.bf16.mxu1 %v4037_v1 }
 0x691   :  { %3761 = vmatpush1.bf16.msra.mxu0 %v4168_v51  ;;  %3789 = vmatpush3.bf16.msra.mxu1 %v4197_v17 }
 0x692   :  { %3763 = vmatprep.subr.bf16.mxu0 %v4172_v52  ;;  %3790 = vmatprep.subr.bf16.mxu1 %v4037_v1 }
 0x695   :  { %3765 = vmatpush1.bf16.msra.mxu0 %v4181_v60  ;;  %3792 = vmatpush3.bf16.msra.mxu1 %v4207_v27 }
 0x696   :  { %3767 = vmatprep.subr.bf16.mxu0 %v4184_v61  ;;  %3793 = vmatprep.subr.bf16.mxu1 %v4037_v1 }
 0x699   :  { %3769 = vmatpush1.bf16.msra.mxu0 %v4191_v8  ;;  %3795 = vmatpush3.bf16.msra.mxu1 %v4215_v33 }
 0x69a   :  { %3771 = vmatprep.subr.bf16.mxu0 %v4194_v11  ;;  %3796 = vmatprep.subr.bf16.mxu1 %v4037_v1 }
 0x69d   :  { %3773 = vmatpush1.bf16.msra.mxu0 %v4201_v21  ;;  %3798 = vmatpush3.bf16.msra.mxu1 %v4222_v39 }
 0x69e   :  { %3775 = vmatprep.subr.bf16.mxu0 %v4204_v24  ;;  %3799 = vmatprep.subr.bf16.mxu1 %v4037_v1 }
 0x6a1   :  { %3777 = vmatpush1.bf16.msra.mxu0 %v4211_v31  ;;  %3801 = vmatpush3.bf16.msra.mxu1 %v4230_v44 }
 0x74f   :  { %v2230_v0 = vpop.f32.mrb[12].mxu0  ;;  %v2301_v10 = vpop.f32.mrb[26].mxu1 }
 0x750   :  { %v2692_v15 = vmul.f32 -1.442695, %v2230_v0  ;;  %v2232_v16 = vpop.f32.mrb[13].mxu0  ;;  %v3195_v22 = vpop.f32.mrb[27].mxu1 }
 0x751   :  { %v2693_v23 = vmul.f32 -1.442695, %v2232_v16 }
 0x752   :  { %3890 = vpow2.f32 %v2692_v15 }
 0x753   :  { %3892 = vpow2.f32 %v2693_v23 }
 0x757   :  { %v2473_v8 = vpop.f32.mrb[28].mxu1 }
 0x758   :  { %v3206_v11 = vpop.f32.mrb[29].mxu1 }
 0x75c   :  { %v3891_v32 = vpop.eup %3890 }
 0x75d   :  { %v2309_v34 = vadd.f32 1.0, %v3891_v32  ;;  %v3893_v38 = vpop.eup %3892 }
 0x75e   :  { %v2316_v42 = vadd.f32 1.0, %v3893_v38 }
 0x75f   :  { %3894 = vrcp.f32 %v2309_v34 }
 0x760   :  { %3896 = vrcp.f32 %v2316_v42 }
 0x769   :  { %v3895_v43 = vpop.eup %3894 }
 0x76a   :  { %v2319_v47 = vmul.f32 %v3895_v43, %v2301_v10  ;;  %v3897_v51 = vpop.eup %3896 }
 0x76b   :  { %v2322_v52 = vsub.f32 1.0, %v3897_v51  ;;  %v2324_v61 = vmul.f32 %v3897_v51, %v4548_v48 }
 0x76c   :  { %v2320_v1 = vadd.f32 %v2319_v47, %v2160_v9 }
 0x76e   :  { %3898 = vtanh.f32 %v2320_v1 }
 0x778   :  { %v3899_v56 = vpop.eup %3898 }
 0x779   :  { %v2323_v60 = vmul.f32 %v3899_v56, %v2322_v52 }
 0x77b   :  { %v2325_v3 = vadd.f32 %v2324_v61, %v2323_v60 }
 0x77d   :  { %2542 = vmatmul.mubr.f32.vlgmr.msra.gmra.mrb[14].mxu0 %v2325_v3  ;;  %3240 = vmatmul.mubr.f32.vlgmr.msra.gmra.mrb[30].mxu1 %v2325_v3 }
 0x850   :  { %v2543_v17 = vpop.f32.mrb[14].mxu0  ;;  %v2614_v21 = vpop.f32.mrb[30].mxu1 }
 0x851   :  { %v2696_v24 = vmul.f32 -1.442695, %v2543_v17  ;;  %v2545_v27 = vpop.f32.mrb[15].mxu0  ;;  %v3241_v31 = vpop.f32.mrb[31].mxu1 }
 0x852   :  { %v2697_v33 = vmul.f32 -1.442695, %v2545_v27 }
 0x853   :  { %3900 = vpow2.f32 %v2696_v24 }
 0x854   :  { %3902 = vpow2.f32 %v2697_v33 }
 0x85d   :  { %v3901_v39 = vpop.eup %3900 }
 0x85e   :  { %v2622_v44 = vadd.f32 1.0, %v3901_v39  ;;  %v3903_v50 = vpop.eup %3902 }
 0x85f   :  { %v2629_v53 = vadd.f32 1.0, %v3903_v50 }
 0x860   :  { %3904 = vrcp.f32 %v2622_v44 }
 0x861   :  { %3906 = vrcp.f32 %v2629_v53 }
 0x86a   :  { %v3905_v54 = vpop.eup %3904 }
 0x86b   :  { %v2632_v55 = vmul.f32 %v3905_v54, %v2614_v21  ;;  %v3907_v58 = vpop.eup %3906 }
 0x86c   :  { %v2635_v59 = vsub.f32 1.0, %v3907_v58  ;;  %v2637_v2 = vmul.f32 %v3907_v58, %v2325_v3 }
 0x86d   :  { %v2633_v57 = vadd.f32 %v2632_v55, %v2473_v8 }
 0x86f   :  { %3908 = vtanh.f32 %v2633_v57 }
 0x879   :  { %v3909_v62 = vpop.eup %3908 }
 0x87a   :  { %v2636_v63 = vmul.f32 %v3909_v62, %v2635_v59 }
 0x87c   :  { %v2638_v4 = vadd.f32 %v2637_v2, %v2636_v63 }
 0x87e   :  { %2648 = vst [vmem:[#allocation11] sm:$0xff] %v2638_v4 }
 0x87f   :  { %4009 = shalt.err (!%p4006_p8)
}
 0x880   :  { %s4010_s15 = scalar_lea.hbm %s4615_s4, 128 }
 0x881   :  { %p4011_p9 = scmp.ne.s32.totalorder %s4615_s4, %s4010_s15  ;;  %p4014_p10 = scmp.lt.u32.totalorder %s4010_s15, %s4615_s4 }
 0x883   :  { %p4016_p11 = pnand %p4014_p10, %p4011_p9 }
 0x885   :  { %4019 = shalt.err (!%p4016_p11)
}
 0x886   :  { %2658 = dma.vmem_to_hbm [thread:$0]  %s2656_s11, 128, %s4615_s4, [#allocation5]  }
 0x887   :  { %4026 = dma.done.wait [#allocation5], 128  }
 0x888   :  { %4027 = vsyncadd [#allocation5], 4294967168 }
 0x889   :  { %2662 = vsyncpa [#allocation4], 1 }
 0x88a   :  { %2663 = vsyncpa [#allocation7], 1 }
 0x88b   :  { %2664 = vsyncpa [#allocation10], 1 }
 0x88c   :  { %2665 = vsyncpa [#allocation5], 1 }

</bundles_post_ra>
